<compile_context>
chip_gen: v7x
topology: tpu7x:2x2x1
jax: 0.10.0
libtpu: 0.0.40
codegen_flags: <defaults>
</compile_context>

<pallas_src>
import numpy as np
import jax
import jax.numpy as jnp
from jax.experimental import pallas as pl
from jax.experimental.pallas import tpu as pltpu


# ------------------------------ fused kernel --------------------------------

def fused_forward_kernel(xflat_ref, ahatT_ref, w1bd_ref, b1t_ref,
                         wrbd_ref, brt_ref, S_ref, fcb_ref,
                         l1w_ref, l1b_ref, l2w_ref, l2b_ref, o_ref):
    """Entire GCNModel forward for B_BLK batch elements (grid axis 0 = batch blocks).

    Flat transposed layout: activations are (B_BLK*channels, nodes) -- the
    batch/channel product on sublanes, the (large, 128-padded) node axis
    lane-dense.  Conv weights arrive block-diagonally tiled over the B_BLK
    batch elements, so every matmul below is a plain 2-D MXU op.
    """
    f32, bf16 = jnp.float32, jnp.bfloat16

    ahatT = ahatT_ref[...]                    # (Np, Np) bf16 == Ahat^T (zero-padded)

    def gcn_layer(hflat, wbd, b_col):
        # per batch:  relu(Ahat @ (X W) + b)
        # flat/transposed:  relu(Wbd @ (hflat @ Ahat^T) + b)
        #                == relu((Wbd @ hflat) @ Ahat^T + b)
        if hflat.shape[0] <= wbd.shape[0]:
            # aggregate first: fewer LHS rows on the dominant N^2 matmul
            agg = jnp.dot(hflat.astype(bf16), ahatT, preferred_element_type=f32)
            out = jnp.dot(wbd, agg.astype(bf16), preferred_element_type=f32)
        else:
            t = jnp.dot(wbd, hflat.astype(bf16), preferred_element_type=f32)
            out = jnp.dot(t.astype(bf16), ahatT, preferred_element_type=f32)
        return jnp.maximum(out + b_col, 0.0)            # (B_BLK*Cout, Np) f32

    # conv1 + relu  (B_BLK batch elements stacked on the sublane axis)
    h = gcn_layer(xflat_ref[0], w1bd_ref[...], b1t_ref[...])       # (B_BLK*H, Np)

    # mode == 'cat':  fc(stack(xs,-1).view(...))  folded per layer:
    #   z[b, n] = sum_l sum_c fcw[c, l] * h_l[b, c, n]   (+ fc bias)
    z = jnp.dot(S_ref[0], h, preferred_element_type=f32)           # (B_BLK, Np)
    n_rest = wrbd_ref.shape[0]                                     # static (L-1)
    for l in range(n_rest):
        h = gcn_layer(h, wrbd_ref[l], brt_ref[l])
        z = z + jnp.dot(S_ref[l + 1], h, preferred_element_type=f32)
    z = z + fcb_ref[0]                                             # scalar (SMEM)
    # do_layers == 1 and eval mode: both dropouts are identity.
    # TODO(synk): training-mode dropout / do_layers==2 path not implemented.

    # head: lin1 -> relu -> lin2 -> log_softmax
    # (padded node rows of lin1_w are zero, so node padding never leaks)
    h1 = jnp.dot(z.astype(bf16), l1w_ref[...], preferred_element_type=f32) + l1b_ref[...]
    h1 = jnp.maximum(h1, 0.0)                                      # (B_BLK, F_fc)
    logits = jnp.dot(h1, l2w_ref[...], preferred_element_type=f32) + l2b_ref[...]
    m = jnp.max(logits, axis=-1, keepdims=True)
    s = logits - m
    lse = jnp.log(jnp.sum(jnp.exp(s), axis=-1, keepdims=True))
    o_ref[0] = s - lse                                             # (B_BLK, C)


# ------------------------------- wrapper -------------------------------------

def _pick_vmem_limit_bytes():
    # ~75% of physical VMEM: ~48 MiB on v7x (64 MiB phys), ~96 MiB on v5e/v6e
    # (128 MiB phys, default scoped limit is only 16/32 MiB).
    try:
        cap = pltpu.get_tpu_info().vmem_capacity_bytes
        return int(min(cap * 3 // 4, 110 << 20))
    except Exception:
        return 48 << 20


def gcn_model_forward(x, ahat, conv_ws, conv_bs, fc_w, fc_b,
                      lin1_w, lin1_b, lin2_w, lin2_b,
                      *, b_blk=8, lane_pad=256):
    f32, bf16 = jnp.float32, jnp.bfloat16
    bs, N, Fin = x.shape
    L = len(conv_ws)
    H = conv_ws[0].shape[1]
    F_fc = lin1_w.shape[1]
    C = lin2_w.shape[1]
    assert L >= 2, "kernel assumes num_layers >= 2 (stacked 'rest' block)"
    assert lin1_w.shape[0] == N, "lin1 in_features (n_genes) must equal num_nodes"

    B = max(1, min(b_blk, bs))                 # batch elements per grid step
    nb = -(-bs // B)                           # number of batch blocks
    bs_pad = nb * B
    Np = -(-N // lane_pad) * lane_pad          # lane-dense, 256-aligned node axis

    # ---- host-side layout plumbing (cheap, once per call) ----
    xT = jnp.swapaxes(x.astype(f32), 1, 2)                              # (bs, Fin, N)
    xT = jnp.pad(xT, ((0, bs_pad - bs), (0, 0), (0, Np - N)))
    xflat = xT.reshape(nb, B * Fin, Np)                                 # batch-major rows

    ahat_p = jnp.pad(ahat.astype(f32), ((0, Np - N), (0, Np - N)))
    ahatT = jnp.transpose(ahat_p).astype(bf16)                          # (Np, Np)

    def block_diag(wT):                         # (Cout, Cin) -> (B*Cout, B*Cin)
        Cout, Cin = wT.shape
        eye = jnp.eye(B, dtype=wT.dtype)
        return (eye[:, None, :, None] * wT[None, :, None, :]).reshape(B * Cout, B * Cin)

    w1bd = block_diag(conv_ws[0].T.astype(f32)).astype(bf16)            # (B*H, B*Fin)
    b1t = jnp.tile(conv_bs[0].reshape(H, 1).astype(f32), (B, 1))        # (B*H, 1)
    wrbd = jnp.stack([block_diag(w.T.astype(f32)) for w in conv_ws[1:]]).astype(bf16)
    brt = jnp.stack([jnp.tile(b.reshape(H, 1).astype(f32), (B, 1)) for b in conv_bs[1:]])

    # torch.stack(xs,-1).view(bs,N,H*L) puts the layer index fastest, i.e. the
    # fc weight for (feature h, layer l) is fc_w[h*L + l] -> fcw (H, L).
    # S[l, b, q*H + h] = delta_{bq} * fcw[h, l] folds the 'cat' fc into one
    # tiny (B, B*H) x (B*H, Np) matmul per layer.
    fcw = fc_w.reshape(H, L).astype(f32)
    eyeB = jnp.eye(B, dtype=f32)
    S = (eyeB[None, :, :, None] * fcw.T[:, None, None, :]).reshape(L, B, B * H)
    fcb = fc_b.reshape(1).astype(f32)                                   # SMEM scalar

    l1w = jnp.pad(lin1_w.astype(f32), ((0, Np - N), (0, 0))).astype(bf16)  # (Np, F_fc)
    l1b = lin1_b.reshape(1, F_fc).astype(f32)
    l2w = lin2_w.astype(f32)
    l2b = lin2_b.reshape(1, C).astype(f32)

    # Single-buffer every grid-invariant operand (index_map always (0, ...)).
    inv = dict(pipeline_mode=pl.Buffered(1))

    # TODO(synk): at production N (n_genes ~ 15k) the dense bf16 Ahat^T
    # (~N^2*2 bytes) no longer fits VMEM (single-buffered crossover ~5k nodes
    # on v7x / ~7k on v5e-v6e): switch ahatT to memory_space=pl.ANY and stream
    # (N_tile x Np) row tiles with pltpu.emit_pipeline (N_tile 512-1024),
    # keeping the (B_BLK*H, Np) activations + f32 accumulator in VMEM scratch;
    # optionally quantize Ahat to fp8 on v7x / int8 on v5e-v6e.
    out = pl.pallas_call(
        fused_forward_kernel,
        out_shape=jax.ShapeDtypeStruct((nb, B, C), jnp.float32),
        grid=(nb,),
        in_specs=[
            pl.BlockSpec((1, B * Fin, Np), lambda i: (i, 0, 0)),          # x (per block)
            pl.BlockSpec((Np, Np), lambda i: (0, 0), **inv),              # Ahat^T
            pl.BlockSpec((B * H, B * Fin), lambda i: (0, 0), **inv),      # W1^T blockdiag
            pl.BlockSpec((B * H, 1), lambda i: (0, 0), **inv),            # b1 tiled
            pl.BlockSpec((L - 1, B * H, B * H), lambda i: (0, 0, 0), **inv),  # Wl^T blockdiag
            pl.BlockSpec((L - 1, B * H, 1), lambda i: (0, 0, 0), **inv),  # bl tiled
            pl.BlockSpec((L, B, B * H), lambda i: (0, 0, 0), **inv),      # fc fold matrices
            pl.BlockSpec(memory_space=pltpu.MemorySpace.SMEM),            # fc bias scalar
            pl.BlockSpec((Np, F_fc), lambda i: (0, 0), **inv),            # lin1 W (bf16)
            pl.BlockSpec((1, F_fc), lambda i: (0, 0), **inv),             # lin1 b
            pl.BlockSpec((F_fc, C), lambda i: (0, 0), **inv),             # lin2 W
            pl.BlockSpec((1, C), lambda i: (0, 0), **inv),                # lin2 b
        ],
        out_specs=pl.BlockSpec((1, B, C), lambda i: (i, 0, 0)),
        compiler_params=pltpu.CompilerParams(
            dimension_semantics=("parallel",),
            vmem_limit_bytes=_pick_vmem_limit_bytes()),
    )(xflat, ahatT, w1bd, b1t, wrbd, brt, S, fcb, l1w, l1b, l2w, l2b)
    return out.reshape(bs_pad, C)[:bs]


# --------------------------- pure-JAX reference -------------------------------

def reference_forward(x, ahat, conv_ws, conv_bs, fc_w, fc_b,
                      lin1_w, lin1_b, lin2_w, lin2_b):
    bs, N, _ = x.shape
    h, xs = x, []
    for w, b in zip(conv_ws, conv_bs):
        h = jax.nn.relu(jnp.einsum('ij,bjf->bif', ahat, h @ w) + b)
        xs.append(h)
    xcat = jnp.stack(xs, axis=-1).reshape(bs, N, -1)        # layer index fastest
    z = (xcat @ fc_w)[..., 0] + fc_b[0]                     # (bs, N)
    h1 = jax.nn.relu(z @ lin1_w + lin1_b)
    logits = h1 @ lin2_w + lin2_b
    return jax.nn.log_softmax(logits, axis=-1)


# ------------------------------ graph helper ----------------------------------

def build_gcn_norm_adj(edge_index, num_nodes):
    # dense Ahat = D^{-1/2} (A + remaining self loops) D^{-1/2}, messages src -> dst
    A = np.zeros((num_nodes, num_nodes), dtype=np.float32)
    src, dst = np.asarray(edge_index)
    np.add.at(A, (dst, src), 1.0)                 # duplicate edges accumulate
    diag = np.arange(num_nodes)
    missing = A[diag, diag] == 0.0
    A[diag[missing], diag[missing]] = 1.0         # add_remaining_self_loops(fill_value=1)
    deg = A.sum(axis=1)
    dinv = np.where(deg > 0.0, deg ** -0.5, 0.0).astype(np.float32)
    return (dinv[:, None] * A * dinv[None, :]).astype(np.float32)


# ---------------------------------- main ---------------------------------------

if __name__ == "__main__":
    bs, num_nodes = 16, 16
    n_features, hidden_gcn, num_layers = 8, 16, 3
    hidden_fc, n_classes = 32, 4
    n_genes = num_nodes          # lin1 input dim must equal num_nodes (fc(x).view(bs, N))

    key = jax.random.PRNGKey(0)
    keys = jax.random.split(key, 16)

    x = jax.random.normal(keys[0], (bs, num_nodes, n_features), dtype=jnp.float32)

    # edge_index: deterministic undirected ring
    s = np.arange(num_nodes)
    d = (s + 1) % num_nodes
    edge_index = np.stack([np.concatenate([s, d]), np.concatenate([d, s])], axis=0)
    ahat = jnp.asarray(build_gcn_norm_adj(edge_index, num_nodes))

    def init_w(k, shape):
        return 0.1 * jax.random.normal(k, shape, dtype=jnp.float32)

    conv_ws, conv_bs = [], []
    dims = [n_features] + [hidden_gcn] * num_layers
    for l in range(num_layers):
        conv_ws.append(init_w(keys[1 + 2 * l], (dims[l], dims[l + 1])))
        conv_bs.append(init_w(keys[2 + 2 * l], (dims[l + 1],)))

    fc_w = init_w(keys[8], (num_layers * hidden_gcn, 1))     # mode == 'cat'
    fc_b = init_w(keys[9], (1,))
    lin1_w = init_w(keys[10], (n_genes, hidden_fc))
    lin1_b = init_w(keys[11], (hidden_fc,))
    lin2_w = init_w(keys[12], (hidden_fc, n_classes))
    lin2_b = init_w(keys[13], (n_classes,))

    out = gcn_model_forward(x, ahat, conv_ws, conv_bs, fc_w, fc_b,
                            lin1_w, lin1_b, lin2_w, lin2_b, b_blk=8)
    out = jax.block_until_ready(out)

    ref = reference_forward(x, ahat, conv_ws, conv_bs, fc_w, fc_b,
                            lin1_w, lin1_b, lin2_w, lin2_b)

    assert out.shape == (bs, n_classes)
    assert bool(jnp.all(jnp.isfinite(out)))
    # rows of log_softmax must exp-sum to 1 (computed in f32 in-kernel)
    assert bool(jnp.allclose(jnp.sum(jnp.exp(out), axis=-1), 1.0, atol=1e-5))
    # bf16 MXU path in the kernel vs f32 reference -> loose tolerance
    assert bool(jnp.allclose(out, ref, atol=5e-2)), (out, ref)
    print("KERNEL_OK")
</pallas_src>

<mosaic_0001>
module attributes {stable_mosaic.version = 11 : i64} {
  func.func @fused_forward_kernel(%arg0: i32, %arg1: memref<1x64x256xf32, #tpu.memory_space<vmem>>, %arg2: memref<256x256xbf16, #tpu.memory_space<vmem>>, %arg3: memref<128x64xbf16, #tpu.memory_space<vmem>>, %arg4: memref<128x1xf32, #tpu.memory_space<vmem>>, %arg5: memref<2x128x128xbf16, #tpu.memory_space<vmem>>, %arg6: memref<2x128x1xf32, #tpu.memory_space<vmem>>, %arg7: memref<3x8x128xf32, #tpu.memory_space<vmem>>, %arg8: memref<1xf32, #tpu.memory_space<smem>>, %arg9: memref<256x32xbf16, #tpu.memory_space<vmem>>, %arg10: memref<1x32xf32, #tpu.memory_space<vmem>>, %arg11: memref<32x4xf32, #tpu.memory_space<vmem>>, %arg12: memref<1x4xf32, #tpu.memory_space<vmem>>, %arg13: memref<1x8x4xf32, #tpu.memory_space<vmem>>) attributes {dimension_semantics = [#tpu.dimension_semantics<parallel>], iteration_bounds = array<i64: 2>, scalar_prefetch = 0 : i64, scratch_operands = 0 : i64, tpu.core_type = #tpu.core_type<tc>, window_params = [{transform_indices = @transform_0, window_bounds = array<i64: 1, 64, 256>}, {pipeline_mode = #tpu.pipeline_mode<synchronous>, transform_indices = @transform_1, window_bounds = array<i64: 256, 256>}, {pipeline_mode = #tpu.pipeline_mode<synchronous>, transform_indices = @transform_2, window_bounds = array<i64: 128, 64>}, {pipeline_mode = #tpu.pipeline_mode<synchronous>, transform_indices = @transform_3, window_bounds = array<i64: 128, 1>}, {pipeline_mode = #tpu.pipeline_mode<synchronous>, transform_indices = @transform_4, window_bounds = array<i64: 2, 128, 128>}, {pipeline_mode = #tpu.pipeline_mode<synchronous>, transform_indices = @transform_5, window_bounds = array<i64: 2, 128, 1>}, {pipeline_mode = #tpu.pipeline_mode<synchronous>, transform_indices = @transform_6, window_bounds = array<i64: 3, 8, 128>}, {transform_indices = @transform_7, window_bounds = array<i64: 1>}, {pipeline_mode = #tpu.pipeline_mode<synchronous>, transform_indices = @transform_8, window_bounds = array<i64: 256, 32>}, {pipeline_mode = #tpu.pipeline_mode<synchronous>, transform_indices = @transform_9, window_bounds = array<i64: 1, 32>}, {pipeline_mode = #tpu.pipeline_mode<synchronous>, transform_indices = @transform_10, window_bounds = array<i64: 32, 4>}, {pipeline_mode = #tpu.pipeline_mode<synchronous>, transform_indices = @transform_11, window_bounds = array<i64: 1, 4>}, {transform_indices = @transform_12, window_bounds = array<i64: 1, 8, 4>}]} {
    %c0 = arith.constant 0 : index
    %c0_0 = arith.constant 0 : index
    %0 = vector.load %arg2[%c0, %c0_0] : memref<256x256xbf16, #tpu.memory_space<vmem>>, vector<256x256xbf16>
    %c0_1 = arith.constant 0 : index
    %c0_2 = arith.constant 0 : index
    %c0_3 = arith.constant 0 : index
    %1 = vector.load %arg1[%c0_1, %c0_2, %c0_3] : memref<1x64x256xf32, #tpu.memory_space<vmem>>, vector<1x64x256xf32>
    %2 = vector.shape_cast %1 : vector<1x64x256xf32> to vector<64x256xf32>
    %c0_4 = arith.constant 0 : index
    %c0_5 = arith.constant 0 : index
    %3 = vector.load %arg3[%c0_4, %c0_5] : memref<128x64xbf16, #tpu.memory_space<vmem>>, vector<128x64xbf16>
    %c0_6 = arith.constant 0 : index
    %c0_7 = arith.constant 0 : index
    %4 = vector.load %arg4[%c0_6, %c0_7] : memref<128x1xf32, #tpu.memory_space<vmem>>, vector<128x1xf32>
    %5 = arith.truncf %2 : vector<64x256xf32> to vector<64x256xbf16>
    %cst = arith.constant dense<0.000000e+00> : vector<64x256xf32>
    %6 = tpu.matmul %5, %0, %cst {dimension_numbers = #tpu.dot_dimension_numbers<[1], [0], [0], [1], [0, 0, 1, 1], [], []>} : vector<64x256xbf16>, vector<256x256xbf16>, vector<64x256xf32> -> vector<64x256xf32>
    %7 = arith.truncf %6 : vector<64x256xf32> to vector<64x256xbf16>
    %cst_8 = arith.constant dense<0.000000e+00> : vector<128x256xf32>
    %8 = tpu.matmul %3, %7, %cst_8 {dimension_numbers = #tpu.dot_dimension_numbers<[1], [0], [0], [1], [0, 0, 1, 1], [], []>} : vector<128x64xbf16>, vector<64x256xbf16>, vector<128x256xf32> -> vector<128x256xf32>
    %9 = vector.broadcast %4 : vector<128x1xf32> to vector<128x256xf32>
    %10 = arith.addf %8, %9 : vector<128x256xf32>
    %cst_9 = arith.constant 0.000000e+00 : f32
    %11 = vector.broadcast %cst_9 : f32 to vector<128x256xf32>
    %12 = arith.maximumf %10, %11 : vector<128x256xf32>
    %c0_10 = arith.constant 0 : index
    %c0_11 = arith.constant 0 : index
    %c0_12 = arith.constant 0 : index
    %13 = vector.load %arg7[%c0_10, %c0_11, %c0_12] : memref<3x8x128xf32, #tpu.memory_space<vmem>>, vector<1x8x128xf32>
    %14 = vector.shape_cast %13 : vector<1x8x128xf32> to vector<8x128xf32>
    %cst_13 = arith.constant dense<0.000000e+00> : vector<8x256xf32>
    %15 = tpu.matmul %14, %12, %cst_13 {dimension_numbers = #tpu.dot_dimension_numbers<[1], [0], [0], [1], [0, 0, 1, 1], [], []>} : vector<8x128xf32>, vector<128x256xf32>, vector<8x256xf32> -> vector<8x256xf32>
    %c0_14 = arith.constant 0 : index
    %c0_15 = arith.constant 0 : index
    %c0_16 = arith.constant 0 : index
    %16 = vector.load %arg5[%c0_14, %c0_15, %c0_16] : memref<2x128x128xbf16, #tpu.memory_space<vmem>>, vector<1x128x128xbf16>
    %17 = vector.shape_cast %16 : vector<1x128x128xbf16> to vector<128x128xbf16>
    %c0_17 = arith.constant 0 : index
    %c0_18 = arith.constant 0 : index
    %c0_19 = arith.constant 0 : index
    %18 = vector.load %arg6[%c0_17, %c0_18, %c0_19] : memref<2x128x1xf32, #tpu.memory_space<vmem>>, vector<1x128x1xf32>
    %19 = vector.shape_cast %18 : vector<1x128x1xf32> to vector<128x1xf32>
    %20 = arith.truncf %12 : vector<128x256xf32> to vector<128x256xbf16>
    %cst_20 = arith.constant dense<0.000000e+00> : vector<128x256xf32>
    %21 = tpu.matmul %20, %0, %cst_20 {dimension_numbers = #tpu.dot_dimension_numbers<[1], [0], [0], [1], [0, 0, 1, 1], [], []>} : vector<128x256xbf16>, vector<256x256xbf16>, vector<128x256xf32> -> vector<128x256xf32>
    %22 = arith.truncf %21 : vector<128x256xf32> to vector<128x256xbf16>
    %cst_21 = arith.constant dense<0.000000e+00> : vector<128x256xf32>
    %23 = tpu.matmul %17, %22, %cst_21 {dimension_numbers = #tpu.dot_dimension_numbers<[1], [0], [0], [1], [0, 0, 1, 1], [], []>} : vector<128x128xbf16>, vector<128x256xbf16>, vector<128x256xf32> -> vector<128x256xf32>
    %24 = vector.broadcast %19 : vector<128x1xf32> to vector<128x256xf32>
    %25 = arith.addf %23, %24 : vector<128x256xf32>
    %cst_22 = arith.constant 0.000000e+00 : f32
    %26 = vector.broadcast %cst_22 : f32 to vector<128x256xf32>
    %27 = arith.maximumf %25, %26 : vector<128x256xf32>
    %c1 = arith.constant 1 : index
    %c0_23 = arith.constant 0 : index
    %c0_24 = arith.constant 0 : index
    %28 = vector.load %arg7[%c1, %c0_23, %c0_24] : memref<3x8x128xf32, #tpu.memory_space<vmem>>, vector<1x8x128xf32>
    %29 = vector.shape_cast %28 : vector<1x8x128xf32> to vector<8x128xf32>
    %cst_25 = arith.constant dense<0.000000e+00> : vector<8x256xf32>
    %30 = tpu.matmul %29, %27, %cst_25 {dimension_numbers = #tpu.dot_dimension_numbers<[1], [0], [0], [1], [0, 0, 1, 1], [], []>} : vector<8x128xf32>, vector<128x256xf32>, vector<8x256xf32> -> vector<8x256xf32>
    %31 = arith.addf %15, %30 : vector<8x256xf32>
    %c1_26 = arith.constant 1 : index
    %c0_27 = arith.constant 0 : index
    %c0_28 = arith.constant 0 : index
    %32 = vector.load %arg5[%c1_26, %c0_27, %c0_28] : memref<2x128x128xbf16, #tpu.memory_space<vmem>>, vector<1x128x128xbf16>
    %33 = vector.shape_cast %32 : vector<1x128x128xbf16> to vector<128x128xbf16>
    %c1_29 = arith.constant 1 : index
    %c0_30 = arith.constant 0 : index
    %c0_31 = arith.constant 0 : index
    %34 = vector.load %arg6[%c1_29, %c0_30, %c0_31] : memref<2x128x1xf32, #tpu.memory_space<vmem>>, vector<1x128x1xf32>
    %35 = vector.shape_cast %34 : vector<1x128x1xf32> to vector<128x1xf32>
    %36 = arith.truncf %27 : vector<128x256xf32> to vector<128x256xbf16>
    %cst_32 = arith.constant dense<0.000000e+00> : vector<128x256xf32>
    %37 = tpu.matmul %36, %0, %cst_32 {dimension_numbers = #tpu.dot_dimension_numbers<[1], [0], [0], [1], [0, 0, 1, 1], [], []>} : vector<128x256xbf16>, vector<256x256xbf16>, vector<128x256xf32> -> vector<128x256xf32>
    %38 = arith.truncf %37 : vector<128x256xf32> to vector<128x256xbf16>
    %cst_33 = arith.constant dense<0.000000e+00> : vector<128x256xf32>
    %39 = tpu.matmul %33, %38, %cst_33 {dimension_numbers = #tpu.dot_dimension_numbers<[1], [0], [0], [1], [0, 0, 1, 1], [], []>} : vector<128x128xbf16>, vector<128x256xbf16>, vector<128x256xf32> -> vector<128x256xf32>
    %40 = vector.broadcast %35 : vector<128x1xf32> to vector<128x256xf32>
    %41 = arith.addf %39, %40 : vector<128x256xf32>
    %cst_34 = arith.constant 0.000000e+00 : f32
    %42 = vector.broadcast %cst_34 : f32 to vector<128x256xf32>
    %43 = arith.maximumf %41, %42 : vector<128x256xf32>
    %c2 = arith.constant 2 : index
    %c0_35 = arith.constant 0 : index
    %c0_36 = arith.constant 0 : index
    %44 = vector.load %arg7[%c2, %c0_35, %c0_36] : memref<3x8x128xf32, #tpu.memory_space<vmem>>, vector<1x8x128xf32>
    %45 = vector.shape_cast %44 : vector<1x8x128xf32> to vector<8x128xf32>
    %cst_37 = arith.constant dense<0.000000e+00> : vector<8x256xf32>
    %46 = tpu.matmul %45, %43, %cst_37 {dimension_numbers = #tpu.dot_dimension_numbers<[1], [0], [0], [1], [0, 0, 1, 1], [], []>} : vector<8x128xf32>, vector<128x256xf32>, vector<8x256xf32> -> vector<8x256xf32>
    %47 = arith.addf %31, %46 : vector<8x256xf32>
    %c0_38 = arith.constant 0 : index
    %48 = memref.load %arg8[%c0_38] : memref<1xf32, #tpu.memory_space<smem>>
    %49 = vector.broadcast %48 : f32 to vector<8x256xf32>
    %50 = arith.addf %47, %49 : vector<8x256xf32>
    %51 = arith.truncf %50 : vector<8x256xf32> to vector<8x256xbf16>
    %c0_39 = arith.constant 0 : index
    %c0_40 = arith.constant 0 : index
    %52 = vector.load %arg9[%c0_39, %c0_40] : memref<256x32xbf16, #tpu.memory_space<vmem>>, vector<256x32xbf16>
    %cst_41 = arith.constant dense<0.000000e+00> : vector<8x32xf32>
    %53 = tpu.matmul %51, %52, %cst_41 {dimension_numbers = #tpu.dot_dimension_numbers<[1], [0], [0], [1], [0, 0, 1, 1], [], []>} : vector<8x256xbf16>, vector<256x32xbf16>, vector<8x32xf32> -> vector<8x32xf32>
    %c0_42 = arith.constant 0 : index
    %c0_43 = arith.constant 0 : index
    %54 = vector.load %arg10[%c0_42, %c0_43] : memref<1x32xf32, #tpu.memory_space<vmem>>, vector<1x32xf32>
    %55 = vector.broadcast %54 : vector<1x32xf32> to vector<8x32xf32>
    %56 = arith.addf %53, %55 : vector<8x32xf32>
    %cst_44 = arith.constant 0.000000e+00 : f32
    %57 = vector.broadcast %cst_44 : f32 to vector<8x32xf32>
    %58 = arith.maximumf %56, %57 : vector<8x32xf32>
    %c0_45 = arith.constant 0 : index
    %c0_46 = arith.constant 0 : index
    %59 = vector.load %arg11[%c0_45, %c0_46] : memref<32x4xf32, #tpu.memory_space<vmem>>, vector<32x4xf32>
    %cst_47 = arith.constant dense<0.000000e+00> : vector<8x4xf32>
    %60 = tpu.matmul %58, %59, %cst_47 {dimension_numbers = #tpu.dot_dimension_numbers<[1], [0], [0], [1], [0, 0, 1, 1], [], []>} : vector<8x32xf32>, vector<32x4xf32>, vector<8x4xf32> -> vector<8x4xf32>
    %c0_48 = arith.constant 0 : index
    %c0_49 = arith.constant 0 : index
    %61 = vector.load %arg12[%c0_48, %c0_49] : memref<1x4xf32, #tpu.memory_space<vmem>>, vector<1x4xf32>
    %62 = vector.broadcast %61 : vector<1x4xf32> to vector<8x4xf32>
    %63 = arith.addf %60, %62 : vector<8x4xf32>
    %cst_50 = arith.constant dense<0xFF800000> : vector<8xf32>
    %64 = vector.multi_reduction <maximumf>, %63, %cst_50 [1] : vector<8x4xf32> to vector<8xf32>
    %65 = vector.shape_cast %64 : vector<8xf32> to vector<8x1xf32>
    %66 = vector.broadcast %65 : vector<8x1xf32> to vector<8x4xf32>
    %67 = arith.subf %63, %66 : vector<8x4xf32>
    %68 = math.exp %67 : vector<8x4xf32>
    %cst_51 = arith.constant dense<0.000000e+00> : vector<8xf32>
    %69 = vector.multi_reduction <add>, %68, %cst_51 [1] : vector<8x4xf32> to vector<8xf32>
    %70 = vector.shape_cast %69 : vector<8xf32> to vector<8x1xf32>
    %71 = math.log %70 : vector<8x1xf32>
    %72 = vector.broadcast %71 : vector<8x1xf32> to vector<8x4xf32>
    %73 = arith.subf %67, %72 : vector<8x4xf32>
    %c0_52 = arith.constant 0 : index
    %c0_53 = arith.constant 0 : index
    %c0_54 = arith.constant 0 : index
    %74 = vector.load %arg13[%c0_52, %c0_53, %c0_54] : memref<1x8x4xf32, #tpu.memory_space<vmem>>, vector<1x8x4xf32>
    %75 = vector.shape_cast %74 : vector<1x8x4xf32> to vector<8x4xf32>
    %76 = vector.shape_cast %73 : vector<8x4xf32> to vector<1x8x4xf32>
    tpu.vector_store %arg13[%c0_52, %c0_53, %c0_54], %76 {strides = array<i32>} : memref<1x8x4xf32, #tpu.memory_space<vmem>>, vector<1x8x4xf32>,
    return
  }
  func.func @transform_0(%arg0: i32) -> (i32, i32, i32) {
    %c0_i32 = arith.constant 0 : i32
    %c0_i32_0 = arith.constant 0 : i32
    %c0_i32_1 = arith.constant 0 : i32
    return %arg0, %c0_i32, %c0_i32_0 : i32, i32, i32
  }
  func.func @transform_1(%arg0: i32) -> (i32, i32) {
    %c0_i32 = arith.constant 0 : i32
    %c0_i32_0 = arith.constant 0 : i32
    %c0_i32_1 = arith.constant 0 : i32
    return %c0_i32, %c0_i32_0 : i32, i32
  }
  func.func @transform_2(%arg0: i32) -> (i32, i32) {
    %c0_i32 = arith.constant 0 : i32
    %c0_i32_0 = arith.constant 0 : i32
    %c0_i32_1 = arith.constant 0 : i32
    return %c0_i32, %c0_i32_0 : i32, i32
  }
  func.func @transform_3(%arg0: i32) -> (i32, i32) {
    %c0_i32 = arith.constant 0 : i32
    %c0_i32_0 = arith.constant 0 : i32
    %c0_i32_1 = arith.constant 0 : i32
    return %c0_i32, %c0_i32_0 : i32, i32
  }
  func.func @transform_4(%arg0: i32) -> (i32, i32, i32) {
    %c0_i32 = arith.constant 0 : i32
    %c0_i32_0 = arith.constant 0 : i32
    %c0_i32_1 = arith.constant 0 : i32
    %c0_i32_2 = arith.constant 0 : i32
    return %c0_i32, %c0_i32_0, %c0_i32_1 : i32, i32, i32
  }
  func.func @transform_5(%arg0: i32) -> (i32, i32, i32) {
    %c0_i32 = arith.constant 0 : i32
    %c0_i32_0 = arith.constant 0 : i32
    %c0_i32_1 = arith.constant 0 : i32
    %c0_i32_2 = arith.constant 0 : i32
    return %c0_i32, %c0_i32_0, %c0_i32_1 : i32, i32, i32
  }
  func.func @transform_6(%arg0: i32) -> (i32, i32, i32) {
    %c0_i32 = arith.constant 0 : i32
    %c0_i32_0 = arith.constant 0 : i32
    %c0_i32_1 = arith.constant 0 : i32
    %c0_i32_2 = arith.constant 0 : i32
    return %c0_i32, %c0_i32_0, %c0_i32_1 : i32, i32, i32
  }
  func.func @transform_7(%arg0: i32) -> i32 {
    %c0_i32 = arith.constant 0 : i32
    %c0_i32_0 = arith.constant 0 : i32
    return %c0_i32 : i32
  }
  func.func @transform_8(%arg0: i32) -> (i32, i32) {
    %c0_i32 = arith.constant 0 : i32
    %c0_i32_0 = arith.constant 0 : i32
    %c0_i32_1 = arith.constant 0 : i32
    return %c0_i32, %c0_i32_0 : i32, i32
  }
  func.func @transform_9(%arg0: i32) -> (i32, i32) {
    %c0_i32 = arith.constant 0 : i32
    %c0_i32_0 = arith.constant 0 : i32
    %c0_i32_1 = arith.constant 0 : i32
    return %c0_i32, %c0_i32_0 : i32, i32
  }
  func.func @transform_10(%arg0: i32) -> (i32, i32) {
    %c0_i32 = arith.constant 0 : i32
    %c0_i32_0 = arith.constant 0 : i32
    %c0_i32_1 = arith.constant 0 : i32
    return %c0_i32, %c0_i32_0 : i32, i32
  }
  func.func @transform_11(%arg0: i32) -> (i32, i32) {
    %c0_i32 = arith.constant 0 : i32
    %c0_i32_0 = arith.constant 0 : i32
    %c0_i32_1 = arith.constant 0 : i32
    return %c0_i32, %c0_i32_0 : i32, i32
  }
  func.func @transform_12(%arg0: i32) -> (i32, i32, i32) {
    %c0_i32 = arith.constant 0 : i32
    %c0_i32_0 = arith.constant 0 : i32
    %c0_i32_1 = arith.constant 0 : i32
    return %arg0, %c0_i32, %c0_i32_0 : i32, i32, i32
  }
}

</mosaic_0001>

<bundles_post_ra>
// kernel: tpu_custom_call.1
= control target key start
LH: loop header
LB: loop body
LE: loop exit
PB: predicated region body
PF: predicated region fallthrough
CT: control target
= control target key end

     0   :  { %s3865_s0 = inlined_call_operand.vmem [shape: f32[2,64,256], index: 0, kind: input, shape index: {}]   ;;  %s3866_s1 = inlined_call_operand.vmem [shape: bf16[256,256], index: 1, kind: input, shape index: {}]   ;;  %s3867_s2 = inlined_call_operand.vmem [shape: bf16[128,64], index: 2, kind: input, shape index: {}]   ;;  %s3868_s3 = inlined_call_operand.vmem [shape: f32[128,1], index: 3, kind: input, shape index: {}]   ;;  %s3869_s4 = inlined_call_operand.vmem [shape: bf16[2,128,128], index: 4, kind: input, shape index: {}]   ;;  %s3870_s5 = inlined_call_operand.vmem [shape: f32[2,128,1], index: 5, kind: input, shape index: {}]   ;;  %s3871_s6 = inlined_call_operand.hbm [shape: f32[3,8,128], index: 6, kind: input, shape index: {}]   ;;  %s3872_s7 = inlined_call_operand.<no memory space> [shape: f32[1], index: 7, kind: input, shape index: {}]   ;;  %s3873_s8 = inlined_call_operand.vmem [shape: bf16[256,32], index: 8, kind: input, shape index: {}]   ;;  %s3874_s9 = inlined_call_operand.vmem [shape: f32[1,32], index: 9, kind: input, shape index: {}]   ;;  %s3875_s10 = inlined_call_operand.vmem [shape: f32[32,4], index: 10, kind: input, shape index: {}]   ;;  %s3876_s11 = inlined_call_operand.vmem [shape: f32[1,4], index: 11, kind: input, shape index: {}]   ;;  %s3877_s12 = inlined_call_operand.vmem [shape: f32[2,8,4], index: 12, kind: output, shape index: {}]  }
   0x1   :  { %17 = sst [smem:[#allocation2]] %s3872_s7 }
   0x2   :  { %18 = vsyncpa [#allocation4], 0  ;;  %s3064_s23 = smov 0  }
   0x3 LB: > { %s3070_s24 = sadd.s32 4294967295, %s2987_s23   ;;  %p2518_p0 = scmp.ge.s32.totalorder %s2987_s23, 1  ;;  %s2987_s23 = sphi %s3064_s23, %s24_s23  }
   0x4   : > { %p312_p1 = scmp.lt.s32.totalorder %s2987_s23, 3  ;;  %s2989_s25 = smov [#allocation3]  }
   0x5   : > { %s339_s26 = sshll.u32 %s2989_s25, 4  ;;  %p3878_p3 = scmp.eq.s32.totalorder %s3070_s24, 0  ;;  %s340_s26 = int_to_ptr.vmem [resolvable:$true] %s339_s26 }
   0x6   : > { %p3074_p2 = pnand %p2518_p0, %p312_p1  ;;  %s2949_s30 = scalar_lea.hbm %s3871_s6, 384 }
   0x7   : > { %p2950_p6 = scmp.ne.s32.totalorder %s3871_s6, %s2949_s30  ;;  %p2956_p10 = scmp.lt.u32.totalorder %s2949_s30, %s3871_s6 }
   0x8   : > { %s3880_s7 = scalar_select %p3074_p2, 1, 0 }
   0x9   : > { %p2808_p4 = pneg %p3074_p2 }
   0xb   : > { %p3083_p5 = pnand %p3878_p3, %p2808_p4 }
   0xd   : > { %p2951_p7 = pneg %p3083_p5 }
   0xf   : > { %p2952_p8 = pnand %p2951_p7, %p2950_p6 }
  0x11   : > { %p2953_p9 = pneg %p2952_p8 }
  0x13   : > { %p2958_p11 = pnand %p2956_p10, %p2953_p9 }
  0x15   : > { %2961 = shalt.err (!%p2958_p11)
}
  0x16   : > { %s2962_s17 = scalar_lea.vmem %s340_s26, 384  ;;  %p2970_p1 = scmp.lt.s32.totalorder %s340_s26, %s340_s26 }
  0x17   : > { %p2963_p12 = scmp.ne.s32.totalorder %s340_s26, %s2962_s17  ;;  %p2971_p4 = scmp.lt.s32.totalorder %s2962_s17, %s2962_s17 }
  0x19   : > { %p2965_p13 = pnand %p2963_p12, %p2951_p7  ;;  %p2972_p3 = por %p2971_p4, %p2970_p1 }
  0x1b   : > { %p2966_p0 = pneg %p2965_p13 }
  0x1d   : > { %p2973_p2 = pnand %p2972_p3, %p2966_p0 }
  0x1f   : > { %2976 = shalt.err (!%p2973_p2)
}
  0x20   : > { %s2990_s18 = smov 128   ;;  %s2991_s19 = smov 8  }
  0x21   : > { %2811 = dma.hbm_to_vmem [thread:$0]  (!%p3083_p5), %s3871_s6, 384, %s340_s26, [#allocation4], %s2990_s18, %s2990_s18, %s2991_s19  }
  0x22   : > { %p3882_p6 = scmp.ne.s32.totalorder %s3880_s7, 0 }
  0x23   : > { %p3883_p8 = scmp.eq.s32.totalorder (!%p3882_p6), %s3070_s24, 0 }
  0x24   : > { %378 = sbr.rel (%p3882_p6) target bundleno = 2585 (0xa19), region = 68 }
  0x2b   : > { %2982 = dma.done.wait (%p3883_p8), [#allocation4], 384   ;;  %p3884_p7 = pmov %p3883_p8 }
  0x2c   : > { %v3112_v0 = vld [vmem:[%s3866_s1 + $0x4] ss:$8 sps:$4 sm:$0xff]   ;;  %v3117_v1 = vld [vmem:[%s3866_s1] ss:$8 sps:$4 sm:$0xff]   ;;  %v3123_v2 = vld [vmem:[%s3866_s1 + $0x14] ss:$8 sps:$4 sm:$0xff]  }
  0x2d   : > { %2984 = vsyncadd (%p3884_p7), [#allocation4], 4294966912  ;;  %677 = vmatprep.subr.bf16.mxu0 %v3112_v0  ;;  %v3129_v3 = vld [vmem:[%s3866_s1 + $0x10] ss:$8 sps:$4 sm:$0xff]   ;;  %v3135_v4 = vld [vmem:[%s3866_s1 + $0x24] ss:$8 sps:$4 sm:$0xff]  }
  0x2e   : > { %678 = vmatpush1.bf16.msra.mxu0 %v3117_v1  ;;  %v3141_v5 = vld [vmem:[%s3866_s1 + $0x20] ss:$8 sps:$4 sm:$0xff]   ;;  %p419_p2 = scmp.lt.s32.totalorder %s3070_s24, 1  ;;  %v3148_v6 = vld [vmem:[%s3866_s1 + $0x34] ss:$8 sps:$4 sm:$0xff]   ;;  %v2992_v56 = vmov 0  }
  0x2f   : > { %679 = vmatprep.subr.bf16.mxu0 %v3123_v2  ;;  %v3154_v7 = vld [vmem:[%s3866_s1 + $0x30] ss:$8 sps:$4 sm:$0xff]   ;;  %v3163_v8 = vld [vmem:[%s3866_s1 + $0x44] ss:$8 sps:$4 sm:$0xff]   ;;  %v3169_v9 = vld [vmem:[%s3866_s1 + $0x40] ss:$8 sps:$4 sm:$0xff]   ;;  %2829 = vset.pattern.permute.xlu0 %v2992_v56 }
  0x30   : > { %s3886_s24 = smov (!%p419_p2, %s3070_s24), 1  ;;  %v3176_v10 = vld [vmem:[%s3866_s1 + $0x54] ss:$8 sps:$4 sm:$0xff]   ;;  %v3187_v11 = vld [vmem:[%s3866_s1 + $0x50] ss:$8 sps:$4 sm:$0xff]   ;;  %v493_v57 = vld [vmem:[%s3868_s3] sm:$0xff]  ;;  %2830 = vset.pattern.permute.xlu1 %v2992_v56  ;;  %935 = vmatprep.mubr.bf16.mxu1 %v2992_v56 }
  0x31   : > { %s2643_s28 = sshll.u32 %s3886_s24, 7  ;;  %v3193_v12 = vld [vmem:[%s3866_s1 + $0x64] ss:$8 sps:$4 sm:$0xff]   ;;  %v3201_v16 = vld [vmem:[%s3866_s1 + $0x60] ss:$8 sps:$4 sm:$0xff]   ;;  %760 = vperm.xlu0 %2829, %v493_v57   ;;  %v495_v59 = vld [vmem:[%s3868_s3 + $0x10] sm:$0xff] }
  0x32   : > { %680 = vmatpush1.bf16.msra.mxu0 %v3129_v3  ;;  %s3181_s13 = scalar_lea.vmem %s3865_s0, %s2643_s28  ;;  %v3207_v17 = vld [vmem:[%s3866_s1 + $0x74] ss:$8 sps:$4 sm:$0xff]   ;;  %v3212_v18 = vld [vmem:[%s3866_s1 + $0x70] ss:$8 sps:$4 sm:$0xff]   ;;  %v3217_v19 = vld [vmem:[%s3866_s1 + $0x84] ss:$8 sps:$4 sm:$0xff]   ;;  %770 = vperm.xlu1 %2830, %v495_v59  }
  0x33   : > { %681 = vmatprep.subr.bf16.mxu0 %v3135_v4  ;;  %v462_v13 = vld [vmem:[%s3181_s13 + $0x8] sm:$0xff]  ;;  %v464_v14 = vld [vmem:[%s3181_s13 + $0x18] sm:$0xff]  ;;  %v461_v35 = vld [vmem:[%s3181_s13] sm:$0xff]  ;;  %vm878_vm0 = vcmask 523264   ;;  %s2170_s14 = sld [smem:[#allocation2]]  ;;  %vm2995_vm1 = vmmov 0  }
  0x34   : > { %v510_v15 = vpack.c.bf16 %v464_v14, %v462_v13  ;;  %v3224_v20 = vld [vmem:[%s3866_s1 + $0x80] ss:$8 sps:$4 sm:$0xff]   ;;  %v3229_v21 = vld [vmem:[%s3866_s1 + $0x94] ss:$8 sps:$4 sm:$0xff]   ;;  %v3236_v22 = vld [vmem:[%s3866_s1 + $0x90] ss:$8 sps:$4 sm:$0xff]  }
  0x35   : > { %v3241_v23 = vld [vmem:[%s3866_s1 + $0xa4] ss:$8 sps:$4 sm:$0xff]   ;;  %v3248_v24 = vld [vmem:[%s3866_s1 + $0xa0] ss:$8 sps:$4 sm:$0xff]   ;;  %v3253_v25 = vld [vmem:[%s3866_s1 + $0xb4] ss:$8 sps:$4 sm:$0xff]  }
  0x36   : > { %682 = vmatpush1.bf16.msra.mxu0 %v3141_v5  ;;  %709 = vmatprep.mubr.bf16.mxu0 %v510_v15  ;;  %v3260_v26 = vld [vmem:[%s3866_s1 + $0xb0] ss:$8 sps:$4 sm:$0xff]   ;;  %v3265_v27 = vld [vmem:[%s3866_s1 + $0xc4] ss:$8 sps:$4 sm:$0xff]   ;;  %v3272_v28 = vld [vmem:[%s3866_s1 + $0xc0] ss:$8 sps:$4 sm:$0xff]  }
  0x37   : > { %683 = vmatprep.subr.bf16.mxu0 %v3148_v6  ;;  %v3277_v29 = vld [vmem:[%s3866_s1 + $0xd4] ss:$8 sps:$4 sm:$0xff]   ;;  %v3284_v30 = vld [vmem:[%s3866_s1 + $0xd0] ss:$8 sps:$4 sm:$0xff]   ;;  %v3289_v31 = vld [vmem:[%s3866_s1 + $0xe4] ss:$8 sps:$4 sm:$0xff]  }
  0x38   : > { %v3297_v32 = vld [vmem:[%s3866_s1 + $0xe0] ss:$8 sps:$4 sm:$0xff]   ;;  %v3303_v33 = vld [vmem:[%s3866_s1 + $0xf4] ss:$8 sps:$4 sm:$0xff]   ;;  %v3309_v34 = vld [vmem:[%s3866_s1 + $0xf0] ss:$8 sps:$4 sm:$0xff]  }
  0x39   : > { %v463_v36 = vld [vmem:[%s3181_s13 + $0x10] sm:$0xff]  ;;  %v466_v37 = vld [vmem:[%s3181_s13 + $0x28] sm:$0xff]  ;;  %v468_v38 = vld [vmem:[%s3181_s13 + $0x38] sm:$0xff]  ;;  %vm2363_vm2 = vcmask 261120   ;;  %vm2437_vm3 = vcmask 31744   ;;  %s2525_s7 = sshll.u32 %s3886_s24, 3 }
  0x3a   : > { %684 = vmatpush1.bf16.msra.mxu0 %v3154_v7  ;;  %v509_v39 = vpack.c.bf16 %v463_v36, %v461_v35  ;;  %v512_v40 = vpack.c.bf16 %v468_v38, %v466_v37  ;;  %v465_v41 = vld [vmem:[%s3181_s13 + $0x20] sm:$0xff]  ;;  %v467_v42 = vld [vmem:[%s3181_s13 + $0x30] sm:$0xff]  ;;  %v470_v43 = vld [vmem:[%s3181_s13 + $0x48] sm:$0xff]  ;;  %s427_s30 = scalar_lea.vmem %s3877_s12, %s2525_s7 }
  0x3b   : > { %685 = vmatprep.subr.bf16.mxu0 %v3163_v8  ;;  %v472_v44 = vld [vmem:[%s3181_s13 + $0x58] sm:$0xff]  ;;  %v511_v45 = vpack.c.bf16 %v467_v42, %v465_v41  ;;  %v469_v47 = vld [vmem:[%s3181_s13 + $0x40] sm:$0xff]  ;;  %v471_v48 = vld [vmem:[%s3181_s13 + $0x50] sm:$0xff] }
  0x3c   : > { %v514_v46 = vpack.c.bf16 %v472_v44, %v470_v43  ;;  %v474_v49 = vld [vmem:[%s3181_s13 + $0x68] sm:$0xff]  ;;  %v476_v50 = vld [vmem:[%s3181_s13 + $0x78] sm:$0xff]  ;;  %v513_v51 = vpack.c.bf16 %v471_v48, %v469_v47  ;;  %v473_v53 = vld [vmem:[%s3181_s13 + $0x60] sm:$0xff] }
  0x3d   : > { %v516_v52 = vpack.c.bf16 %v476_v50, %v474_v49  ;;  %v475_v54 = vld [vmem:[%s3181_s13 + $0x70] sm:$0xff]  ;;  %v494_v58 = vld [vmem:[%s3868_s3 + $0x8] sm:$0xff]  ;;  %v497_v60 = vld [vmem:[%s3868_s3 + $0x20] sm:$0xff] }
  0x3e   : > { %686 = vmatpush1.bf16.msra.mxu0 %v3169_v9  ;;  %v515_v55 = vpack.c.bf16 %v475_v54, %v473_v53  ;;  %765 = vperm.xlu0 %2829, %v494_v58   ;;  %v496_v61 = vld [vmem:[%s3868_s3 + $0x18] sm:$0xff]  ;;  %v499_v62 = vld [vmem:[%s3868_s3 + $0x30] sm:$0xff]  ;;  %v498_v63 = vld [vmem:[%s3868_s3 + $0x28] sm:$0xff] }
  0x3f   : > { %687 = vmatprep.subr.bf16.mxu0 %v3176_v10  ;;  %775 = vperm.xlu1 %2830, %v496_v61   ;;  %v501_v13 = vld [vmem:[%s3868_s3 + $0x40] sm:$0xff]  ;;  %v500_v14 = vld [vmem:[%s3868_s3 + $0x38] sm:$0xff]  ;;  %v503_v15 = vld [vmem:[%s3868_s3 + $0x50] sm:$0xff] }
  0x40   : > { %v502_v35 = vld [vmem:[%s3868_s3 + $0x48] sm:$0xff]  ;;  %v505_v36 = vld [vmem:[%s3868_s3 + $0x60] sm:$0xff]  ;;  %v504_v37 = vld [vmem:[%s3868_s3 + $0x58] sm:$0xff] }
  0x41   : > { %v507_v38 = vld [vmem:[%s3868_s3 + $0x70] sm:$0xff]  ;;  %v508_v41 = vld [vmem:[%s3868_s3 + $0x78] sm:$0xff]  ;;  %v1066_v43 = vld [vmem:[%s3870_s5 + $0x8] sm:$0xff] }
  0x42   : > { %688 = vmatpush1.bf16.msra.mxu0 %v3187_v11  ;;  %780 = vperm.xlu0 %2829, %v497_v60   ;;  %v1067_v42 = vld [vmem:[%s3870_s5 + $0x10] sm:$0xff]  ;;  %v1069_v44 = vld [vmem:[%s3870_s5 + $0x20] sm:$0xff]  ;;  %v1070_v47 = vld [vmem:[%s3870_s5 + $0x28] sm:$0xff] }
  0x43   : > { %689 = vmatprep.subr.bf16.mxu0 %v3193_v12  ;;  %785 = vperm.xlu1 %2830, %v498_v63   ;;  %v1073_v48 = vld [vmem:[%s3870_s5 + $0x40] sm:$0xff]  ;;  %v1072_v49 = vld [vmem:[%s3870_s5 + $0x38] sm:$0xff]  ;;  %v1075_v50 = vld [vmem:[%s3870_s5 + $0x50] sm:$0xff] }
  0x44   : > { %v1076_v53 = vld [vmem:[%s3870_s5 + $0x58] sm:$0xff]  ;;  %v1079_v54 = vld [vmem:[%s3870_s5 + $0x70] sm:$0xff]  ;;  %v2598_v57 = vld [vmem:[%s3870_s5 + $0x80] sm:$0xff] }
  0x45   : > { %v1080_v58 = vld [vmem:[%s3870_s5 + $0x78] sm:$0xff]  ;;  %v2600_v59 = vld [vmem:[%s3870_s5 + $0x90] sm:$0xff]  ;;  %v2599_v60 = vld [vmem:[%s3870_s5 + $0x88] sm:$0xff] }
  0x46   : > { %690 = vmatpush1.bf16.msra.mxu0 %v3201_v16  ;;  %790 = vperm.xlu0 %2829, %v499_v62   ;;  %v2602_v61 = vld [vmem:[%s3870_s5 + $0xa0] sm:$0xff]  ;;  %v2601_v62 = vld [vmem:[%s3870_s5 + $0x98] sm:$0xff]  ;;  %v2604_v63 = vld [vmem:[%s3870_s5 + $0xb0] sm:$0xff] }
  0x47   : > { %691 = vmatprep.subr.bf16.mxu0 %v3207_v17  ;;  %795 = vperm.xlu1 %2830, %v500_v14   ;;  %v2606_v14 = vld [vmem:[%s3870_s5 + $0xc0] sm:$0xff] }
  0x4a   : > { %692 = vmatpush1.bf16.msra.mxu0 %v3212_v18  ;;  %800 = vperm.xlu0 %2829, %v501_v13   ;;  %v2603_v13 = vld [vmem:[%s3870_s5 + $0xa8] sm:$0xff] }
  0x4b   : > { %693 = vmatprep.subr.bf16.mxu0 %v3217_v19  ;;  %805 = vperm.xlu1 %2830, %v502_v35   ;;  %v2608_v35 = vld [vmem:[%s3870_s5 + $0xd0] sm:$0xff] }
  0x4e   : > { %694 = vmatpush1.bf16.msra.mxu0 %v3224_v20  ;;  %810 = vperm.xlu0 %2829, %v503_v15   ;;  %v2605_v15 = vld [vmem:[%s3870_s5 + $0xb8] sm:$0xff] }
  0x4f   : > { %695 = vmatprep.subr.bf16.mxu0 %v3229_v21  ;;  %815 = vperm.xlu1 %2830, %v504_v37   ;;  %v2610_v37 = vld [vmem:[%s3870_s5 + $0xe0] sm:$0xff] }
  0x52   : > { %696 = vmatpush1.bf16.msra.mxu0 %v3236_v22  ;;  %820 = vperm.xlu0 %2829, %v505_v36   ;;  %v2607_v36 = vld [vmem:[%s3870_s5 + $0xc8] sm:$0xff] }
  0x53   : > { %697 = vmatprep.subr.bf16.mxu0 %v3241_v23 }
  0x56   : > { %698 = vmatpush1.bf16.msra.mxu0 %v3248_v24  ;;  %830 = vperm.xlu0 %2829, %v507_v38   ;;  %v2609_v38 = vld [vmem:[%s3870_s5 + $0xd8] sm:$0xff] }
  0x57   : > { %699 = vmatprep.subr.bf16.mxu0 %v3253_v25 }
  0x5a   : > { %700 = vmatpush1.bf16.msra.mxu0 %v3260_v26 }
  0x5b   : > { %701 = vmatprep.subr.bf16.mxu0 %v3265_v27 }
  0x5e   : > { %702 = vmatpush1.bf16.msra.mxu0 %v3272_v28 }
  0x5f   : > { %703 = vmatprep.subr.bf16.mxu0 %v3277_v29 }
  0x62   : > { %704 = vmatpush1.bf16.msra.mxu0 %v3284_v30 }
  0x63   : > { %705 = vmatprep.subr.bf16.mxu0 %v3289_v31 }
  0x66   : > { %706 = vmatpush1.bf16.msra.mxu0 %v3297_v32 }
  0x67   : > { %707 = vmatprep.subr.bf16.mxu0 %v3303_v33 }
  0x6a   : > { %708 = vmatpush1.bf16.msra.mxu0 %v3309_v34 }
  0x6d   : > { %710 = vmatmul.mubr.bf16.vlgmr.msra.gmra.mrb[0].mxu0 %v509_v39  ;;  %v506_v39 = vld [vmem:[%s3868_s3 + $0x68] sm:$0xff] }
  0x6e   : > { %719 = vmatprep.mubr.bf16.mxu0 %v512_v40  ;;  %v1065_v40 = vld [vmem:[%s3870_s5] sm:$0xff]  ;;  %825 = vperm.xlu1 %2830, %v506_v39   ;;  %v2612_v39 = vld [vmem:[%s3870_s5 + $0xf0] sm:$0xff] }
  0x6f   : > { %1228 = vperm.xlu0 %2829, %v1065_v40   ;;  %v2611_v40 = vld [vmem:[%s3870_s5 + $0xe8] sm:$0xff] }
  0x72   : > { %835 = vperm.xlu1 %2830, %v508_v41   ;;  %v2613_v41 = vld [vmem:[%s3870_s5 + $0xf8] sm:$0xff] }
  0x73   : > { %1238 = vperm.xlu0 %2829, %v1067_v42  }
  0x75   : > { %720 = vmatmul.mubr.bf16.gmra.mrb[4].mxu0 %v511_v45  ;;  %v1068_v45 = vld [vmem:[%s3870_s5 + $0x18] sm:$0xff] }
  0x76   : > { %729 = vmatprep.mubr.bf16.mxu0 %v514_v46  ;;  %1233 = vperm.xlu1 %2830, %v1066_v43   ;;  %v1071_v46 = vld [vmem:[%s3870_s5 + $0x30] sm:$0xff] }
  0x77   : > { %1248 = vperm.xlu0 %2829, %v1069_v44  }
  0x7a   : > { %1243 = vperm.xlu1 %2830, %v1068_v45  }
  0x7b   : > { %1258 = vperm.xlu0 %2829, %v1071_v46  }
  0x7d   : > { %730 = vmatmul.mubr.bf16.gmra.mrb[8].mxu0 %v513_v51  ;;  %v1074_v51 = vld [vmem:[%s3870_s5 + $0x48] sm:$0xff] }
  0x7e   : > { %739 = vmatprep.mubr.bf16.mxu0 %v516_v52  ;;  %1253 = vperm.xlu1 %2830, %v1070_v47   ;;  %v1077_v52 = vld [vmem:[%s3870_s5 + $0x60] sm:$0xff] }
  0x7f   : > { %1268 = vperm.xlu0 %2829, %v1073_v48  }
  0x82   : > { %1263 = vperm.xlu1 %2830, %v1072_v49  }
  0x83   : > { %1278 = vperm.xlu0 %2829, %v1075_v50  }
  0x85   : > { %740 = vmatmul.mubr.bf16.gmra.mrb[12].mxu0 %v515_v55  ;;  %v1078_v55 = vld [vmem:[%s3870_s5 + $0x68] sm:$0xff] }
  0x86   : > { %1386 = vmatprep.mubr.bf16.mxu0 %v2992_v56  ;;  %1273 = vperm.xlu1 %2830, %v1074_v51  }
  0x87   : > { %1288 = vperm.xlu0 %2829, %v1077_v52  }
  0x8a   : > { %1283 = vperm.xlu1 %2830, %v1076_v53  }
  0x8b   : > { %1298 = vperm.xlu0 %2829, %v1079_v54  }
  0x8e   : > { %1293 = vperm.xlu1 %2830, %v1078_v55  }
  0x8f   : > { %1824 = vperm.xlu0 %2829, %v2598_v57  }
  0x92   : > { %1303 = vperm.xlu1 %2830, %v1080_v58  }
  0x93   : > { %1834 = vperm.xlu0 %2829, %v2600_v59  }
  0x96   : > { %1829 = vperm.xlu1 %2830, %v2599_v60  }
  0x97   : > { %1844 = vperm.xlu0 %2829, %v2602_v61  }
  0x9a   : > { %1839 = vperm.xlu1 %2830, %v2601_v62  }
  0x9b   : > { %1854 = vperm.xlu0 %2829, %v2604_v63  }
  0x9e   : > { %1849 = vperm.xlu1 %2830, %v2603_v13  }
  0x9f   : > { %1864 = vperm.xlu0 %2829, %v2606_v14  }
  0xa2   : > { %1859 = vperm.xlu1 %2830, %v2605_v15  }
  0xa3   : > { %1874 = vperm.xlu0 %2829, %v2608_v35   ;;  %v2879_v35 = vld [vmem:[%s3867_s2] sm:$0xff]  }
  0xa6   : > { %1869 = vperm.xlu1 %2830, %v2607_v36   ;;  %v2880_v36 = vld [vmem:[%s3867_s2 + $0x8] sm:$0xff]  }
  0xa7   : > { %1884 = vperm.xlu0 %2829, %v2610_v37  }
  0xaa   : > { %1879 = vperm.xlu1 %2830, %v2609_v38  }
  0xab   : > { %1894 = vperm.xlu0 %2829, %v2612_v39  }
  0xae   : > { %1889 = vperm.xlu1 %2830, %v2611_v40  }
  0xb2   : > { %1899 = vperm.xlu1 %2830, %v2613_v41  }
 0x140   : > { %v711_v42 = vpop.f32.mrb[0].mxu0 }
 0x141   : > { %v713_v43 = vpop.f32.mrb[1].mxu0 }
 0x142   : > { %v715_v44 = vpop.f32.mrb[2].mxu0 }
 0x143   : > { %v750_v45 = vpack.c.bf16 %v715_v44, %v711_v42  ;;  %v717_v46 = vpop.f32.mrb[3].mxu0 }
 0x144   : > { %v751_v47 = vpack.c.bf16 %v717_v46, %v713_v43 }
 0x146   : > { %903 = vmatprep.subr.bf16.mxu1 %v751_v47 }
 0x147   : > { %904 = vmatpush1.bf16.msra.mxu1 %v750_v45 }
 0x148   : > { %v721_v48 = vpop.f32.mrb[4].mxu0 }
 0x149   : > { %v723_v49 = vpop.f32.mrb[5].mxu0 }
 0x14a   : > { %v725_v50 = vpop.f32.mrb[6].mxu0 }
 0x14b   : > { %v752_v51 = vpack.c.bf16 %v725_v50, %v721_v48  ;;  %v727_v52 = vpop.f32.mrb[7].mxu0 }
 0x14c   : > { %v753_v53 = vpack.c.bf16 %v727_v52, %v723_v49 }
 0x14e   : > { %905 = vmatprep.subr.bf16.mxu1 %v753_v53 }
 0x14f   : > { %906 = vmatpush1.bf16.msra.mxu1 %v752_v51 }
 0x150   : > { %v731_v54 = vpop.f32.mrb[8].mxu0 }
 0x151   : > { %v733_v55 = vpop.f32.mrb[9].mxu0 }
 0x152   : > { %v735_v57 = vpop.f32.mrb[10].mxu0 }
 0x153   : > { %v754_v58 = vpack.c.bf16 %v735_v57, %v731_v54  ;;  %v737_v59 = vpop.f32.mrb[11].mxu0 }
 0x154   : > { %v755_v60 = vpack.c.bf16 %v737_v59, %v733_v55 }
 0x156   : > { %907 = vmatprep.subr.bf16.mxu1 %v755_v60 }
 0x157   : > { %908 = vmatpush1.bf16.msra.mxu1 %v754_v58 }
 0x158   : > { %v741_v61 = vpop.f32.mrb[12].mxu0 }
 0x159   : > { %v743_v62 = vpop.f32.mrb[13].mxu0 }
 0x15a   : > { %v745_v63 = vpop.f32.mrb[14].mxu0 }
 0x15b   : > { %v756_v13 = vpack.c.bf16 %v745_v63, %v741_v61  ;;  %v747_v14 = vpop.f32.mrb[15].mxu0 }
 0x15c   : > { %v757_v15 = vpack.c.bf16 %v747_v14, %v743_v62 }
 0x15e   : > { %909 = vmatprep.subr.bf16.mxu1 %v757_v15 }
 0x15f   : > { %910 = vmatpush1.bf16.msra.mxu1 %v756_v13 }
 0x160   : > { %1097 = vmatprep.subr.bf16.mxu1 %v3112_v0  ;;  %v2881_v0 = vld [vmem:[%s3867_s2 + $0x10] sm:$0xff]  }
 0x162   : > { %2566 = vmatmul.mubr.msk.bf16.vlgmr.msra.gmra.mrb[0].mxu1 %vm878_vm0, %v2879_v35 }
 0x163   : > { %945 = vmatprep.mubr.bf16.mxu1 %v2992_v56  ;;  %1098 = vmatpush1.bf16.msra.mxu1 %v3117_v1  ;;  %v2882_v1 = vld [vmem:[%s3867_s2 + $0x18] sm:$0xff]  }
 0x164   : > { %1099 = vmatprep.subr.bf16.mxu1 %v3123_v2  ;;  %v2883_v2 = vld [vmem:[%s3867_s2 + $0x20] sm:$0xff]  }
 0x167   : > { %1100 = vmatpush1.bf16.msra.mxu1 %v3129_v3  ;;  %v2884_v3 = vld [vmem:[%s3867_s2 + $0x28] sm:$0xff]  }
 0x168   : > { %1101 = vmatprep.subr.bf16.mxu1 %v3135_v4  ;;  %v2885_v4 = vld [vmem:[%s3867_s2 + $0x30] sm:$0xff]  }
 0x16a   : > { %2567 = vmatmul.mubr.msk.bf16.gmra.mrb[4].mxu1 %vm878_vm0, %v2880_v36 }
 0x16b   : > { %955 = vmatprep.mubr.bf16.mxu1 %v2992_v56  ;;  %1102 = vmatpush1.bf16.msra.mxu1 %v3141_v5  ;;  %v2886_v5 = vld [vmem:[%s3867_s2 + $0x38] sm:$0xff]  }
 0x16c   : > { %1103 = vmatprep.subr.bf16.mxu1 %v3148_v6  ;;  %v761_v6 = vpop.permute.xlu0 %760 }
 0x16f   : > { %1104 = vmatpush1.bf16.msra.mxu1 %v3154_v7 }
 0x170   : > { %1105 = vmatprep.subr.bf16.mxu1 %v3163_v8 }
 0x172   : > { %2568 = vmatmul.mubr.msk.bf16.gmra.mrb[8].mxu1 %vm878_vm0, %v2881_v0 }
 0x173   : > { %965 = vmatprep.mubr.bf16.mxu1 %v2992_v56  ;;  %1106 = vmatpush1.bf16.msra.mxu1 %v3169_v9 }
 0x174   : > { %1107 = vmatprep.subr.bf16.mxu1 %v3176_v10  ;;  %v766_v10 = vpop.permute.xlu0 %765 }
 0x177   : > { %1108 = vmatpush1.bf16.msra.mxu1 %v3187_v11 }
 0x178   : > { %1109 = vmatprep.subr.bf16.mxu1 %v3193_v12  ;;  %v781_v48 = vpop.permute.xlu0 %780 }
 0x17a   : > { %2569 = vmatmul.mubr.msk.bf16.gmra.mrb[12].mxu1 %vm878_vm0, %v2882_v1 }
 0x17b   : > { %975 = vmatprep.mubr.bf16.mxu1 %v2992_v56  ;;  %1110 = vmatpush1.bf16.msra.mxu1 %v3201_v16 }
 0x17c   : > { %1111 = vmatprep.subr.bf16.mxu1 %v3207_v17  ;;  %v791_v14 = vpop.permute.xlu0 %790 }
 0x17f   : > { %1112 = vmatpush1.bf16.msra.mxu1 %v3212_v18  ;;  %v771_v18 = vpop.permute.xlu1 %770 }
 0x180   : > { %1113 = vmatprep.subr.bf16.mxu1 %v3217_v19 }
 0x182   : > { %2570 = vmatmul.mubr.msk.bf16.gmra.mrb[16].mxu1 %vm878_vm0, %v2883_v2 }
 0x183   : > { %985 = vmatprep.mubr.bf16.mxu1 %v2992_v56  ;;  %1114 = vmatpush1.bf16.msra.mxu1 %v3224_v20  ;;  %v776_v37 = vpop.permute.xlu1 %775 }
 0x184   : > { %1115 = vmatprep.subr.bf16.mxu1 %v3229_v21 }
 0x187   : > { %1116 = vmatpush1.bf16.msra.mxu1 %v3236_v22  ;;  %v786_v53 = vpop.permute.xlu1 %785 }
 0x188   : > { %1117 = vmatprep.subr.bf16.mxu1 %v3241_v23 }
 0x18a   : > { %2571 = vmatmul.mubr.msk.bf16.gmra.mrb[20].mxu1 %vm878_vm0, %v2884_v3 }
 0x18b   : > { %995 = vmatprep.mubr.bf16.mxu1 %v2992_v56  ;;  %1118 = vmatpush1.bf16.msra.mxu1 %v3248_v24  ;;  %v796_v1 = vpop.permute.xlu1 %795 }
 0x18c   : > { %1119 = vmatprep.subr.bf16.mxu1 %v3253_v25 }
 0x18f   : > { %1120 = vmatpush1.bf16.msra.mxu1 %v3260_v26 }
 0x190   : > { %1121 = vmatprep.subr.bf16.mxu1 %v3265_v27 }
 0x192   : > { %2572 = vmatmul.mubr.msk.bf16.gmra.mrb[24].mxu1 %vm878_vm0, %v2885_v4 }
 0x193   : > { %1005 = vmatprep.mubr.bf16.mxu1 %v2992_v56  ;;  %1122 = vmatpush1.bf16.msra.mxu1 %v3272_v28 }
 0x194   : > { %1123 = vmatprep.subr.bf16.mxu1 %v3277_v29 }
 0x197   : > { %1124 = vmatpush1.bf16.msra.mxu1 %v3284_v30 }
 0x198   : > { %1125 = vmatprep.subr.bf16.mxu1 %v3289_v31 }
 0x19a   : > { %2573 = vmatmul.mubr.msk.bf16.gmra.mrb[28].mxu1 %vm878_vm0, %v2886_v5 }
 0x19b   : > { %1126 = vmatpush1.bf16.msra.mxu1 %v3297_v32 }
 0x19c   : > { %1127 = vmatprep.subr.bf16.mxu1 %v3303_v33 }
 0x19f   : > { %1128 = vmatpush1.bf16.msra.mxu1 %v3309_v34 }
 0x235   : > { %v937_v7 = vpop.f32.mrb[0].mxu1 }
 0x236   : > { %v938_v8 = vadd.f32 %v937_v7, %v761_v6  ;;  %v939_v9 = vpop.f32.mrb[1].mxu1 }
 0x237   : > { %v940_v11 = vadd.f32 %v939_v9, %v761_v6  ;;  %v941_v12 = vpop.f32.mrb[2].mxu1 }
 0x238   : > { %v942_v16 = vadd.f32 %v941_v12, %v766_v10  ;;  %v943_v17 = vpop.f32.mrb[3].mxu1  ;;  %v1016_v20 = vmax.f32 %v938_v8, 0.0  ;;  %v801_v12 = vpop.permute.xlu0 %800 }
 0x239   : > { %v944_v19 = vadd.f32 %v943_v17, %v766_v10  ;;  %v1017_v22 = vmax.f32 %v940_v11, 0.0 }
 0x23a   : > { %v1018_v21 = vmax.f32 %v942_v16, 0.0 }
 0x23b   : > { %v1019_v23 = vmax.f32 %v944_v19, 0.0 }
 0x23c   : > { %v3546_v24 = vpack.c.bf16 %v1018_v21, %v1016_v20  ;;  %v806_v20 = vpop.permute.xlu1 %805 }
 0x23d   : > { %v3548_v25 = vpack.c.bf16 %v1019_v23, %v1017_v22  ;;  %v947_v26 = vpop.f32.mrb[4].mxu1 }
 0x23e   : > { %v948_v27 = vadd.f32 %v947_v26, %v771_v18  ;;  %v949_v28 = vpop.f32.mrb[5].mxu1 }
 0x23f   : > { %v950_v38 = vadd.f32 %v949_v28, %v771_v18  ;;  %v951_v39 = vpop.f32.mrb[6].mxu1  ;;  %1129 = vmatprep.mubr.bf16.mxu1 %v3548_v25 }
 0x240   : > { %v952_v40 = vadd.f32 %v951_v39, %v776_v37  ;;  %v953_v41 = vpop.f32.mrb[7].mxu1  ;;  %1130 = vmatmul.mubr.bf16.vlgmr.msra.gmra.mrb[32].mxu1 %v3546_v24  ;;  %v1020_v43 = vmax.f32 %v948_v27, 0.0 }
 0x241   : > { %v954_v42 = vadd.f32 %v953_v41, %v776_v37  ;;  %v1021_v45 = vmax.f32 %v950_v38, 0.0  ;;  %v811_v41 = vpop.permute.xlu0 %810 }
 0x242   : > { %v1022_v44 = vmax.f32 %v952_v40, 0.0 }
 0x243   : > { %v1023_v46 = vmax.f32 %v954_v42, 0.0 }
 0x244   : > { %v3552_v47 = vpack.c.bf16 %v1022_v44, %v1020_v43 }
 0x245   : > { %v3554_v49 = vpack.c.bf16 %v1023_v46, %v1021_v45  ;;  %v957_v50 = vpop.f32.mrb[8].mxu1  ;;  %v816_v46 = vpop.permute.xlu1 %815 }
 0x246   : > { %v958_v51 = vadd.f32 %v957_v50, %v781_v48  ;;  %v959_v52 = vpop.f32.mrb[9].mxu1 }
 0x247   : > { %v960_v54 = vadd.f32 %v959_v52, %v781_v48  ;;  %v961_v55 = vpop.f32.mrb[10].mxu1  ;;  %1139 = vmatprep.mubr.bf16.mxu1 %v3554_v49 }
 0x248   : > { %v962_v57 = vadd.f32 %v961_v55, %v786_v53  ;;  %v963_v58 = vpop.f32.mrb[11].mxu1  ;;  %1140 = vmatmul.mubr.bf16.gmra.mrb[36].mxu1 %v3552_v47  ;;  %v1024_v60 = vmax.f32 %v958_v51, 0.0 }
 0x249   : > { %v964_v59 = vadd.f32 %v963_v58, %v786_v53  ;;  %v1025_v62 = vmax.f32 %v960_v54, 0.0 }
 0x24a   : > { %v1026_v61 = vmax.f32 %v962_v57, 0.0 }
 0x24b   : > { %v1027_v63 = vmax.f32 %v964_v59, 0.0 }
 0x24c   : > { %v3558_v13 = vpack.c.bf16 %v1026_v61, %v1024_v60  ;;  %v821_v60 = vpop.permute.xlu0 %820 }
 0x24d   : > { %v3560_v15 = vpack.c.bf16 %v1027_v63, %v1025_v62  ;;  %v967_v35 = vpop.f32.mrb[12].mxu1 }
 0x24e   : > { %v968_v36 = vadd.f32 %v967_v35, %v791_v14  ;;  %v969_v0 = vpop.f32.mrb[13].mxu1  ;;  %v826_v35 = vpop.permute.xlu1 %825 }
 0x24f   : > { %v970_v2 = vadd.f32 %v969_v0, %v791_v14  ;;  %v971_v3 = vpop.f32.mrb[14].mxu1  ;;  %1149 = vmatprep.mubr.bf16.mxu1 %v3560_v15 }
 0x250   : > { %v972_v4 = vadd.f32 %v971_v3, %v796_v1  ;;  %v973_v5 = vpop.f32.mrb[15].mxu1  ;;  %1150 = vmatmul.mubr.bf16.gmra.mrb[40].mxu1 %v3558_v13  ;;  %v1028_v7 = vmax.f32 %v968_v36, 0.0 }
 0x251   : > { %v974_v6 = vadd.f32 %v973_v5, %v796_v1  ;;  %v1029_v9 = vmax.f32 %v970_v2, 0.0 }
 0x252   : > { %v1030_v8 = vmax.f32 %v972_v4, 0.0 }
 0x253   : > { %v1031_v10 = vmax.f32 %v974_v6, 0.0 }
 0x254   : > { %v3564_v11 = vpack.c.bf16 %v1030_v8, %v1028_v7 }
 0x255   : > { %v3566_v16 = vpack.c.bf16 %v1031_v10, %v1029_v9  ;;  %v977_v17 = vpop.f32.mrb[16].mxu1  ;;  %v831_v9 = vpop.permute.xlu0 %830 }
 0x256   : > { %v978_v18 = vadd.f32 %v977_v17, %v801_v12  ;;  %v979_v19 = vpop.f32.mrb[17].mxu1 }
 0x257   : > { %v980_v21 = vadd.f32 %v979_v19, %v801_v12  ;;  %v981_v22 = vpop.f32.mrb[18].mxu1  ;;  %1159 = vmatprep.mubr.bf16.mxu1 %v3566_v16  ;;  %v836_v19 = vpop.permute.xlu1 %835 }
 0x258   : > { %v982_v23 = vadd.f32 %v981_v22, %v806_v20  ;;  %v983_v26 = vpop.f32.mrb[19].mxu1  ;;  %1160 = vmatmul.mubr.bf16.gmra.mrb[44].mxu1 %v3564_v11  ;;  %v1032_v28 = vmax.f32 %v978_v18, 0.0 }
 0x259   : > { %v984_v27 = vadd.f32 %v983_v26, %v806_v20  ;;  %v1033_v38 = vmax.f32 %v980_v21, 0.0 }
 0x25a   : > { %v1034_v37 = vmax.f32 %v982_v23, 0.0 }
 0x25b   : > { %v1035_v39 = vmax.f32 %v984_v27, 0.0 }
 0x25c   : > { %v3570_v40 = vpack.c.bf16 %v1034_v37, %v1032_v28 }
 0x25d   : > { %v3572_v42 = vpack.c.bf16 %v1035_v39, %v1033_v38  ;;  %v987_v43 = vpop.f32.mrb[20].mxu1 }
 0x25e   : > { %v988_v44 = vadd.f32 %v987_v43, %v811_v41  ;;  %v989_v45 = vpop.f32.mrb[21].mxu1 }
 0x25f   : > { %v990_v48 = vadd.f32 %v989_v45, %v811_v41  ;;  %v991_v50 = vpop.f32.mrb[22].mxu1  ;;  %1169 = vmatprep.mubr.bf16.mxu1 %v3572_v42 }
 0x260   : > { %v992_v51 = vadd.f32 %v991_v50, %v816_v46  ;;  %v993_v52 = vpop.f32.mrb[23].mxu1  ;;  %1170 = vmatmul.mubr.bf16.gmra.mrb[48].mxu1 %v3570_v40  ;;  %v1036_v54 = vmax.f32 %v988_v44, 0.0 }
 0x261   : > { %v994_v53 = vadd.f32 %v993_v52, %v816_v46  ;;  %v1037_v57 = vmax.f32 %v990_v48, 0.0 }
 0x262   : > { %v1038_v55 = vmax.f32 %v992_v51, 0.0 }
 0x263   : > { %v1039_v58 = vmax.f32 %v994_v53, 0.0 }
 0x264   : > { %v3576_v59 = vpack.c.bf16 %v1038_v55, %v1036_v54 }
 0x265   : > { %v3578_v61 = vpack.c.bf16 %v1039_v58, %v1037_v57  ;;  %v997_v62 = vpop.f32.mrb[24].mxu1 }
 0x266   : > { %v998_v63 = vadd.f32 %v997_v62, %v821_v60  ;;  %v999_v14 = vpop.f32.mrb[25].mxu1 }
 0x267   : > { %v1000_v36 = vadd.f32 %v999_v14, %v821_v60  ;;  %v1001_v0 = vpop.f32.mrb[26].mxu1  ;;  %1179 = vmatprep.mubr.bf16.mxu1 %v3578_v61 }
 0x268   : > { %v1002_v1 = vadd.f32 %v1001_v0, %v826_v35  ;;  %v1003_v2 = vpop.f32.mrb[27].mxu1  ;;  %1180 = vmatmul.mubr.bf16.gmra.mrb[52].mxu1 %v3576_v59  ;;  %v1040_v4 = vmax.f32 %v998_v63, 0.0 }
 0x269   : > { %v1004_v3 = vadd.f32 %v1003_v2, %v826_v35  ;;  %v1041_v6 = vmax.f32 %v1000_v36, 0.0 }
 0x26a   : > { %v1042_v5 = vmax.f32 %v1002_v1, 0.0 }
 0x26b   : > { %v1043_v7 = vmax.f32 %v1004_v3, 0.0 }
 0x26c   : > { %v3582_v8 = vpack.c.bf16 %v1042_v5, %v1040_v4 }
 0x26d   : > { %v3584_v10 = vpack.c.bf16 %v1043_v7, %v1041_v6  ;;  %v1007_v12 = vpop.f32.mrb[28].mxu1 }
 0x26e   : > { %v1008_v17 = vadd.f32 %v1007_v12, %v831_v9  ;;  %v1009_v18 = vpop.f32.mrb[29].mxu1 }
 0x26f   : > { %v1010_v20 = vadd.f32 %v1009_v18, %v831_v9  ;;  %v1011_v21 = vpop.f32.mrb[30].mxu1  ;;  %1189 = vmatprep.mubr.bf16.mxu1 %v3584_v10 }
 0x270   : > { %v1012_v22 = vadd.f32 %v1011_v21, %v836_v19  ;;  %v1013_v23 = vpop.f32.mrb[31].mxu1  ;;  %1190 = vmatmul.mubr.bf16.gmra.mrb[56].mxu1 %v3582_v8  ;;  %v1044_v27 = vmax.f32 %v1008_v17, 0.0 }
 0x271   : > { %v1014_v26 = vadd.f32 %v1013_v23, %v836_v19  ;;  %v1045_v37 = vmax.f32 %v1010_v20, 0.0 }
 0x272   : > { %v1046_v28 = vmax.f32 %v1012_v22, 0.0 }
 0x273   : > { %v1047_v38 = vmax.f32 %v1014_v26, 0.0 }
 0x274   : > { %v3588_v39 = vpack.c.bf16 %v1046_v28, %v1044_v27 }
 0x275   : > { %v3590_v41 = vpack.c.bf16 %v1047_v38, %v1045_v37 }
 0x277   : > { %1199 = vmatprep.mubr.bf16.mxu1 %v3590_v41 }
 0x278   : > { %1200 = vmatmul.mubr.bf16.gmra.mrb[60].mxu1 %v3588_v39 }
 0x313   : > { %v1131_v43 = vpop.f32.mrb[32].mxu1 }
 0x314   : > { %v1133_v44 = vpop.f32.mrb[33].mxu1 }
 0x315   : > { %v1135_v45 = vpop.f32.mrb[34].mxu1 }
 0x316   : > { %v1210_v46 = vpack.c.bf16 %v1135_v45, %v1131_v43  ;;  %v1137_v48 = vpop.f32.mrb[35].mxu1 }
 0x317   : > { %v1211_v50 = vpack.c.bf16 %v1137_v48, %v1133_v44 }
 0x319   : > { %1354 = vmatprep.subr.bf16.mxu0 %v1211_v50 }
 0x31a   : > { %1355 = vmatpush1.bf16.msra.mxu0 %v1210_v46 }
 0x31b   : > { %v1141_v51 = vpop.f32.mrb[36].mxu1 }
 0x31c   : > { %v1143_v52 = vpop.f32.mrb[37].mxu1 }
 0x31d   : > { %v1145_v53 = vpop.f32.mrb[38].mxu1 }
 0x31e   : > { %v1212_v54 = vpack.c.bf16 %v1145_v53, %v1141_v51  ;;  %v1147_v55 = vpop.f32.mrb[39].mxu1  ;;  %v2923_v53 = vld [vmem:[%s3866_s1 + $0x4] ss:$8 sps:$4 sm:$0xff]  }
 0x31f   : > { %v1213_v57 = vpack.c.bf16 %v1147_v55, %v1143_v52  ;;  %v2887_v52 = vld [vmem:[%s3869_s4] sm:$0xff]   ;;  %v2925_v55 = vld [vmem:[%s3866_s1 + $0x14] ss:$8 sps:$4 sm:$0xff]  }
 0x321   : > { %1356 = vmatprep.subr.bf16.mxu0 %v1213_v57  ;;  %v2888_v57 = vld [vmem:[%s3869_s4 + $0x8] sm:$0xff]  }
 0x322   : > { %1357 = vmatpush1.bf16.msra.mxu0 %v1212_v54  ;;  %v2924_v54 = vld [vmem:[%s3866_s1] ss:$8 sps:$4 sm:$0xff]  }
 0x323   : > { %v1151_v58 = vpop.f32.mrb[40].mxu1 }
 0x324   : > { %v1153_v60 = vpop.f32.mrb[41].mxu1 }
 0x325   : > { %v1155_v62 = vpop.f32.mrb[42].mxu1 }
 0x326   : > { %v1214_v63 = vpack.c.bf16 %v1155_v62, %v1151_v58  ;;  %v1157_v14 = vpop.f32.mrb[43].mxu1  ;;  %v2926_v58 = vld [vmem:[%s3866_s1 + $0x10] ss:$8 sps:$4 sm:$0xff]   ;;  %v2928_v62 = vld [vmem:[%s3866_s1 + $0x20] ss:$8 sps:$4 sm:$0xff]  }
 0x327   : > { %v1215_v35 = vpack.c.bf16 %v1157_v14, %v1153_v60  ;;  %v2927_v60 = vld [vmem:[%s3866_s1 + $0x24] ss:$8 sps:$4 sm:$0xff]   ;;  %v2889_v14 = vld [vmem:[%s3869_s4 + $0x10] sm:$0xff]  }
 0x329   : > { %1358 = vmatprep.subr.bf16.mxu0 %v1215_v35  ;;  %v2930_v35 = vld [vmem:[%s3866_s1 + $0x30] ss:$8 sps:$4 sm:$0xff]  }
 0x32a   : > { %1359 = vmatpush1.bf16.msra.mxu0 %v1214_v63  ;;  %v2929_v63 = vld [vmem:[%s3866_s1 + $0x34] ss:$8 sps:$4 sm:$0xff]  }
 0x32b   : > { %v1161_v36 = vpop.f32.mrb[44].mxu1 }
 0x32c   : > { %v1163_v0 = vpop.f32.mrb[45].mxu1 }
 0x32d   : > { %v1165_v1 = vpop.f32.mrb[46].mxu1 }
 0x32e   : > { %v1216_v2 = vpack.c.bf16 %v1165_v1, %v1161_v36  ;;  %v1167_v3 = vpop.f32.mrb[47].mxu1  ;;  %v2931_v36 = vld [vmem:[%s3866_s1 + $0x44] ss:$8 sps:$4 sm:$0xff]   ;;  %v2933_v1 = vld [vmem:[%s3866_s1 + $0x54] ss:$8 sps:$4 sm:$0xff]  }
 0x32f   : > { %v1217_v4 = vpack.c.bf16 %v1167_v3, %v1163_v0  ;;  %v2932_v0 = vld [vmem:[%s3866_s1 + $0x40] ss:$8 sps:$4 sm:$0xff]   ;;  %v2934_v3 = vld [vmem:[%s3866_s1 + $0x50] ss:$8 sps:$4 sm:$0xff]  }
 0x331   : > { %1360 = vmatprep.subr.bf16.mxu0 %v1217_v4  ;;  %v2935_v4 = vld [vmem:[%s3866_s1 + $0x64] ss:$8 sps:$4 sm:$0xff]  }
 0x332   : > { %1361 = vmatpush1.bf16.msra.mxu0 %v1216_v2  ;;  %v2890_v2 = vld [vmem:[%s3869_s4 + $0x18] sm:$0xff]  }
 0x333   : > { %v1171_v5 = vpop.f32.mrb[48].mxu1 }
 0x334   : > { %v1173_v6 = vpop.f32.mrb[49].mxu1 }
 0x335   : > { %v1175_v7 = vpop.f32.mrb[50].mxu1 }
 0x336   : > { %v1218_v9 = vpack.c.bf16 %v1175_v7, %v1171_v5  ;;  %v1177_v12 = vpop.f32.mrb[51].mxu1  ;;  %v2936_v5 = vld [vmem:[%s3866_s1 + $0x60] ss:$8 sps:$4 sm:$0xff]  }
 0x337   : > { %v1219_v17 = vpack.c.bf16 %v1177_v12, %v1173_v6  ;;  %v2937_v6 = vld [vmem:[%s3866_s1 + $0x74] ss:$8 sps:$4 sm:$0xff]   ;;  %v2891_v7 = vld [vmem:[%s3869_s4 + $0x20] sm:$0xff]  }
 0x338   : > { %v2939_v12 = vld [vmem:[%s3866_s1 + $0x84] ss:$8 sps:$4 sm:$0xff]  }
 0x339   : > { %1362 = vmatprep.subr.bf16.mxu0 %v1219_v17  ;;  %v2940_v17 = vld [vmem:[%s3866_s1 + $0x80] ss:$8 sps:$4 sm:$0xff]  }
 0x33a   : > { %1363 = vmatpush1.bf16.msra.mxu0 %v1218_v9  ;;  %v2938_v9 = vld [vmem:[%s3866_s1 + $0x70] ss:$8 sps:$4 sm:$0xff]  }
 0x33b   : > { %v1181_v18 = vpop.f32.mrb[52].mxu1 }
 0x33c   : > { %v1183_v19 = vpop.f32.mrb[53].mxu1 }
 0x33d   : > { %v1185_v20 = vpop.f32.mrb[54].mxu1 }
 0x33e   : > { %v1220_v21 = vpack.c.bf16 %v1185_v20, %v1181_v18  ;;  %v1187_v22 = vpop.f32.mrb[55].mxu1  ;;  %v2941_v18 = vld [vmem:[%s3866_s1 + $0x94] ss:$8 sps:$4 sm:$0xff]   ;;  %v2942_v20 = vld [vmem:[%s3866_s1 + $0x90] ss:$8 sps:$4 sm:$0xff]  }
 0x33f   : > { %v1221_v23 = vpack.c.bf16 %v1187_v22, %v1183_v19  ;;  %v2892_v19 = vld [vmem:[%s3869_s4 + $0x28] sm:$0xff]  }
 0x340   : > { %v2944_v22 = vld [vmem:[%s3866_s1 + $0xa0] ss:$8 sps:$4 sm:$0xff]  }
 0x341   : > { %1364 = vmatprep.subr.bf16.mxu0 %v1221_v23  ;;  %v2945_v23 = vld [vmem:[%s3866_s1 + $0xb4] ss:$8 sps:$4 sm:$0xff]  }
 0x342   : > { %1365 = vmatpush1.bf16.msra.mxu0 %v1220_v21  ;;  %v2943_v21 = vld [vmem:[%s3866_s1 + $0xa4] ss:$8 sps:$4 sm:$0xff]  }
 0x343   : > { %v1191_v26 = vpop.f32.mrb[56].mxu1 }
 0x344   : > { %v1193_v27 = vpop.f32.mrb[57].mxu1 }
 0x345   : > { %v1195_v28 = vpop.f32.mrb[58].mxu1 }
 0x346   : > { %v1222_v37 = vpack.c.bf16 %v1195_v28, %v1191_v26  ;;  %v1197_v38 = vpop.f32.mrb[59].mxu1  ;;  %v2893_v26 = vld [vmem:[%s3869_s4 + $0x30] sm:$0xff]   ;;  %v2947_v28 = vld [vmem:[%s3866_s1 + $0xc4] ss:$8 sps:$4 sm:$0xff]  }
 0x347   : > { %v1223_v43 = vpack.c.bf16 %v1197_v38, %v1193_v27  ;;  %v2946_v27 = vld [vmem:[%s3866_s1 + $0xb0] ss:$8 sps:$4 sm:$0xff]  }
 0x348   : > { %v2894_v38 = vld [vmem:[%s3869_s4 + $0x38] sm:$0xff]  }
 0x349   : > { %1366 = vmatprep.subr.bf16.mxu0 %v1223_v43  ;;  %v2993_v43 = vmov 0.0  }
 0x34a   : > { %1367 = vmatpush1.bf16.msra.mxu0 %v1222_v37  ;;  %v2948_v37 = vld [vmem:[%s3866_s1 + $0xc0] ss:$8 sps:$4 sm:$0xff]   ;;  %1565 = vmatprep.mubr.f32.mxu1 %v2993_v43 }
 0x34b   : > { %v1201_v44 = vpop.f32.mrb[60].mxu1 }
 0x34c   : > { %v1203_v45 = vpop.f32.mrb[61].mxu1 }
 0x34d   : > { %v1205_v46 = vpop.f32.mrb[62].mxu1 }
 0x34e   : > { %v1224_v48 = vpack.c.bf16 %v1205_v46, %v1201_v44  ;;  %v1207_v50 = vpop.f32.mrb[63].mxu1  ;;  %v1229_v44 = vpop.permute.xlu0 %1228 }
 0x34f   : > { %v1225_v51 = vpack.c.bf16 %v1207_v50, %v1203_v45 }
 0x351   : > { %1368 = vmatprep.subr.bf16.mxu0 %v1225_v51 }
 0x352   : > { %1369 = vmatpush1.bf16.msra.mxu0 %v1224_v48  ;;  %v1234_v48 = vpop.permute.xlu1 %1233 }
 0x353   : > { %1693 = vmatprep.subr.bf16.mxu0 %v2923_v53 }
 0x355   : > { %1387 = vmatmul.mubr.bf16.vlgmr.msra.gmra.mrb[16].mxu0 %v2887_v52 }
 0x356   : > { %1396 = vmatprep.mubr.bf16.mxu0 %v2992_v56  ;;  %1694 = vmatpush1.bf16.msra.mxu0 %v2924_v54 }
 0x357   : > { %1695 = vmatprep.subr.bf16.mxu0 %v2925_v55 }
 0x35a   : > { %1696 = vmatpush1.bf16.msra.mxu0 %v2926_v58 }
 0x35b   : > { %1697 = vmatprep.subr.bf16.mxu0 %v2927_v60 }
 0x35d   : > { %1397 = vmatmul.mubr.bf16.gmra.mrb[20].mxu0 %v2888_v57  ;;  %v1239_v57 = vpop.permute.xlu0 %1238 }
 0x35e   : > { %1406 = vmatprep.mubr.bf16.mxu0 %v2992_v56  ;;  %1698 = vmatpush1.bf16.msra.mxu0 %v2928_v62 }
 0x35f   : > { %1699 = vmatprep.subr.bf16.mxu0 %v2929_v63  ;;  %v1244_v63 = vpop.permute.xlu1 %1243 }
 0x362   : > { %1700 = vmatpush1.bf16.msra.mxu0 %v2930_v35 }
 0x363   : > { %1701 = vmatprep.subr.bf16.mxu0 %v2931_v36 }
 0x365   : > { %1407 = vmatmul.mubr.bf16.gmra.mrb[24].mxu0 %v2889_v14 }
 0x366   : > { %1416 = vmatprep.mubr.bf16.mxu0 %v2992_v56  ;;  %1702 = vmatpush1.bf16.msra.mxu0 %v2932_v0 }
 0x367   : > { %1703 = vmatprep.subr.bf16.mxu0 %v2933_v1 }
 0x36a   : > { %1704 = vmatpush1.bf16.msra.mxu0 %v2934_v3 }
 0x36b   : > { %1705 = vmatprep.subr.bf16.mxu0 %v2935_v4 }
 0x36d   : > { %1417 = vmatmul.mubr.bf16.gmra.mrb[28].mxu0 %v2890_v2 }
 0x36e   : > { %1426 = vmatprep.mubr.bf16.mxu0 %v2992_v56  ;;  %1706 = vmatpush1.bf16.msra.mxu0 %v2936_v5 }
 0x36f   : > { %1707 = vmatprep.subr.bf16.mxu0 %v2937_v6 }
 0x372   : > { %1708 = vmatpush1.bf16.msra.mxu0 %v2938_v9 }
 0x373   : > { %1709 = vmatprep.subr.bf16.mxu0 %v2939_v12 }
 0x375   : > { %1427 = vmatmul.mubr.bf16.gmra.mrb[32].mxu0 %v2891_v7  ;;  %v1249_v7 = vpop.permute.xlu0 %1248 }
 0x376   : > { %1436 = vmatprep.mubr.bf16.mxu0 %v2992_v56  ;;  %1710 = vmatpush1.bf16.msra.mxu0 %v2940_v17 }
 0x377   : > { %1711 = vmatprep.subr.bf16.mxu0 %v2941_v18 }
 0x37a   : > { %1712 = vmatpush1.bf16.msra.mxu0 %v2942_v20 }
 0x37b   : > { %1713 = vmatprep.subr.bf16.mxu0 %v2943_v21 }
 0x37d   : > { %1437 = vmatmul.mubr.bf16.gmra.mrb[36].mxu0 %v2892_v19  ;;  %v1254_v19 = vpop.permute.xlu1 %1253 }
 0x37e   : > { %1446 = vmatprep.mubr.bf16.mxu0 %v2992_v56  ;;  %1714 = vmatpush1.bf16.msra.mxu0 %v2944_v22 }
 0x37f   : > { %1715 = vmatprep.subr.bf16.mxu0 %v2945_v23 }
 0x382   : > { %1716 = vmatpush1.bf16.msra.mxu0 %v2946_v27 }
 0x383   : > { %1717 = vmatprep.subr.bf16.mxu0 %v2947_v28 }
 0x385   : > { %1447 = vmatmul.mubr.bf16.gmra.mrb[40].mxu0 %v2893_v26 }
 0x386   : > { %1456 = vmatprep.mubr.bf16.mxu0 %v2992_v56  ;;  %1718 = vmatpush1.bf16.msra.mxu0 %v2948_v37 }
 0x387   : > { %1719 = vmatprep.subr.bf16.mxu0 %v3277_v29 }
 0x38a   : > { %1720 = vmatpush1.bf16.msra.mxu0 %v3284_v30 }
 0x38b   : > { %1721 = vmatprep.subr.bf16.mxu0 %v3289_v31 }
 0x38d   : > { %1457 = vmatmul.mubr.bf16.gmra.mrb[44].mxu0 %v2894_v38 }
 0x38e   : > { %1722 = vmatpush1.bf16.msra.mxu0 %v3297_v32 }
 0x38f   : > { %1723 = vmatprep.subr.bf16.mxu0 %v3303_v33 }
 0x392   : > { %1724 = vmatpush1.bf16.msra.mxu0 %v3309_v34 }
 0x428   : > { %v1388_v29 = vpop.f32.mrb[16].mxu0 }
 0x429   : > { %v1389_v45 = vadd.f32 %v1388_v29, %v1229_v44  ;;  %v1390_v46 = vpop.f32.mrb[17].mxu0  ;;  %v1259_v29 = vpop.permute.xlu0 %1258 }
 0x42a   : > { %v1391_v50 = vadd.f32 %v1390_v46, %v1229_v44  ;;  %v1392_v51 = vpop.f32.mrb[18].mxu0 }
 0x42b   : > { %v1393_v30 = vadd.f32 %v1392_v51, %v1234_v48  ;;  %v1394_v52 = vpop.f32.mrb[19].mxu0  ;;  %v1467_v53 = vmax.f32 %v1389_v45, 0.0  ;;  %v1264_v51 = vpop.permute.xlu1 %1263 }
 0x42c   : > { %v1395_v31 = vadd.f32 %v1394_v52, %v1234_v48  ;;  %v1468_v32 = vmax.f32 %v1391_v50, 0.0 }
 0x42d   : > { %v1469_v54 = vmax.f32 %v1393_v30, 0.0 }
 0x42e   : > { %v1470_v55 = vmax.f32 %v1395_v31, 0.0 }
 0x42f   : > { %v2684_v33 = vpack.c.bf16 %v1469_v54, %v1467_v53 }
 0x430   : > { %v2682_v34 = vpack.c.bf16 %v1470_v55, %v1468_v32  ;;  %v1398_v58 = vpop.f32.mrb[20].mxu0 }
 0x431   : > { %v1399_v60 = vadd.f32 %v1398_v58, %v1239_v57  ;;  %v1400_v62 = vpop.f32.mrb[21].mxu0  ;;  %v1269_v58 = vpop.permute.xlu0 %1268 }
 0x432   : > { %v1401_v14 = vadd.f32 %v1400_v62, %v1239_v57  ;;  %v1402_v35 = vpop.f32.mrb[22].mxu0  ;;  %2683 = vmatprep.subr.bf16.mxu1 %v2682_v34  ;;  %1725 = vmatprep.mubr.bf16.mxu0 %v2682_v34 }
 0x433   : > { %v1403_v36 = vadd.f32 %v1402_v35, %v1244_v63  ;;  %v1404_v0 = vpop.f32.mrb[23].mxu0  ;;  %2685 = vmatpush1.bf16.msra.mxu1 %v2684_v33  ;;  %1726 = vmatmul.mubr.bf16.vlgmr.msra.gmra.mrb[48].mxu0 %v2684_v33  ;;  %v1471_v2 = vmax.f32 %v1399_v60, 0.0  ;;  %v1274_v35 = vpop.permute.xlu1 %1273 }
 0x434   : > { %v1405_v1 = vadd.f32 %v1404_v0, %v1244_v63  ;;  %v1472_v4 = vmax.f32 %v1401_v14, 0.0 }
 0x435   : > { %v1473_v3 = vmax.f32 %v1403_v36, 0.0 }
 0x436   : > { %v1474_v5 = vmax.f32 %v1405_v1, 0.0 }
 0x437   : > { %v2688_v6 = vpack.c.bf16 %v1473_v3, %v1471_v2 }
 0x438   : > { %v2686_v9 = vpack.c.bf16 %v1474_v5, %v1472_v4  ;;  %v1408_v12 = vpop.f32.mrb[24].mxu0 }
 0x439   : > { %v1409_v17 = vadd.f32 %v1408_v12, %v1249_v7  ;;  %v1410_v18 = vpop.f32.mrb[25].mxu0  ;;  %v1279_v12 = vpop.permute.xlu0 %1278 }
 0x43a   : > { %v1411_v20 = vadd.f32 %v1410_v18, %v1249_v7  ;;  %v1412_v21 = vpop.f32.mrb[26].mxu0  ;;  %2687 = vmatprep.subr.bf16.mxu1 %v2686_v9  ;;  %1735 = vmatprep.mubr.bf16.mxu0 %v2686_v9 }
 0x43b   : > { %v1413_v22 = vadd.f32 %v1412_v21, %v1254_v19  ;;  %v1414_v23 = vpop.f32.mrb[27].mxu0  ;;  %2689 = vmatpush1.bf16.msra.mxu1 %v2688_v6  ;;  %1736 = vmatmul.mubr.bf16.gmra.mrb[52].mxu0 %v2688_v6  ;;  %v1475_v27 = vmax.f32 %v1409_v17, 0.0  ;;  %v1284_v21 = vpop.permute.xlu1 %1283 }
 0x43c   : > { %v1415_v26 = vadd.f32 %v1414_v23, %v1254_v19  ;;  %v1476_v37 = vmax.f32 %v1411_v20, 0.0 }
 0x43d   : > { %v1477_v28 = vmax.f32 %v1413_v22, 0.0 }
 0x43e   : > { %v1478_v38 = vmax.f32 %v1415_v26, 0.0 }
 0x43f   : > { %v2692_v44 = vpack.c.bf16 %v1477_v28, %v1475_v27 }
 0x440   : > { %v2690_v45 = vpack.c.bf16 %v1478_v38, %v1476_v37  ;;  %v1418_v46 = vpop.f32.mrb[28].mxu0 }
 0x441   : > { %v1419_v48 = vadd.f32 %v1418_v46, %v1259_v29  ;;  %v1420_v50 = vpop.f32.mrb[29].mxu0  ;;  %v1289_v46 = vpop.permute.xlu0 %1288 }
 0x442   : > { %v1421_v30 = vadd.f32 %v1420_v50, %v1259_v29  ;;  %v1422_v52 = vpop.f32.mrb[30].mxu0  ;;  %2691 = vmatprep.subr.bf16.mxu1 %v2690_v45  ;;  %1745 = vmatprep.mubr.bf16.mxu0 %v2690_v45 }
 0x443   : > { %v1423_v31 = vadd.f32 %v1422_v52, %v1264_v51  ;;  %v1424_v53 = vpop.f32.mrb[31].mxu0  ;;  %2693 = vmatpush1.bf16.msra.mxu1 %v2692_v44  ;;  %1746 = vmatmul.mubr.bf16.gmra.mrb[56].mxu0 %v2692_v44  ;;  %v1479_v32 = vmax.f32 %v1419_v48, 0.0  ;;  %v1294_v52 = vpop.permute.xlu1 %1293 }
 0x444   : > { %v1425_v54 = vadd.f32 %v1424_v53, %v1264_v51  ;;  %v1480_v33 = vmax.f32 %v1421_v30, 0.0 }
 0x445   : > { %v1481_v55 = vmax.f32 %v1423_v31, 0.0 }
 0x446   : > { %v1482_v57 = vmax.f32 %v1425_v54, 0.0 }
 0x447   : > { %v2696_v34 = vpack.c.bf16 %v1481_v55, %v1479_v32 }
 0x448   : > { %v2694_v60 = vpack.c.bf16 %v1482_v57, %v1480_v33  ;;  %v1428_v62 = vpop.f32.mrb[32].mxu0 }
 0x449   : > { %v1429_v63 = vadd.f32 %v1428_v62, %v1269_v58  ;;  %v1430_v14 = vpop.f32.mrb[33].mxu0  ;;  %v1299_v62 = vpop.permute.xlu0 %1298 }
 0x44a   : > { %v1431_v36 = vadd.f32 %v1430_v14, %v1269_v58  ;;  %v1432_v0 = vpop.f32.mrb[34].mxu0  ;;  %2695 = vmatprep.subr.bf16.mxu1 %v2694_v60  ;;  %1755 = vmatprep.mubr.bf16.mxu0 %v2694_v60 }
 0x44b   : > { %v1433_v1 = vadd.f32 %v1432_v0, %v1274_v35  ;;  %v1434_v2 = vpop.f32.mrb[35].mxu0  ;;  %2697 = vmatpush1.bf16.msra.mxu1 %v2696_v34  ;;  %1756 = vmatmul.mubr.bf16.gmra.mrb[60].mxu0 %v2696_v34  ;;  %v1483_v4 = vmax.f32 %v1429_v63, 0.0  ;;  %v1304_v0 = vpop.permute.xlu1 %1303 }
 0x44c   : > { %v1435_v3 = vadd.f32 %v1434_v2, %v1274_v35  ;;  %v1484_v6 = vmax.f32 %v1431_v36, 0.0 }
 0x44d   : > { %v1485_v5 = vmax.f32 %v1433_v1, 0.0 }
 0x44e   : > { %v1486_v7 = vmax.f32 %v1435_v3, 0.0 }
 0x44f   : > { %v2700_v9 = vpack.c.bf16 %v1485_v5, %v1483_v4 }
 0x450   : > { %v2698_v17 = vpack.c.bf16 %v1486_v7, %v1484_v6  ;;  %v1438_v18 = vpop.f32.mrb[36].mxu0 }
 0x451   : > { %v1439_v19 = vadd.f32 %v1438_v18, %v1279_v12  ;;  %v1440_v20 = vpop.f32.mrb[37].mxu0 }
 0x452   : > { %v1441_v22 = vadd.f32 %v1440_v20, %v1279_v12  ;;  %v1442_v23 = vpop.f32.mrb[38].mxu0  ;;  %2699 = vmatprep.subr.bf16.mxu1 %v2698_v17  ;;  %1765 = vmatprep.mubr.bf16.mxu0 %v2698_v17 }
 0x453   : > { %v1443_v26 = vadd.f32 %v1442_v23, %v1284_v21  ;;  %v1444_v27 = vpop.f32.mrb[39].mxu0  ;;  %2701 = vmatpush1.bf16.msra.mxu1 %v2700_v9  ;;  %1766 = vmatmul.mubr.bf16.gmra.mrb[64].mxu0 %v2700_v9  ;;  %v1487_v37 = vmax.f32 %v1439_v19, 0.0  ;;  %v1500_v19 = vld [vmem:[#allocation3 + $0x8] sm:$0xff] }
 0x454   : > { %v1445_v28 = vadd.f32 %v1444_v27, %v1284_v21  ;;  %v1488_v44 = vmax.f32 %v1441_v22, 0.0 }
 0x455   : > { %v1489_v38 = vmax.f32 %v1443_v26, 0.0 }
 0x456   : > { %v1490_v29 = vmax.f32 %v1445_v28, 0.0 }
 0x457   : > { %v2704_v45 = vpack.c.bf16 %v1489_v38, %v1487_v37 }
 0x458   : > { %v2702_v48 = vpack.c.bf16 %v1490_v29, %v1488_v44  ;;  %v1448_v50 = vpop.f32.mrb[40].mxu0 }
 0x459   : > { %v1449_v51 = vadd.f32 %v1448_v50, %v1289_v46  ;;  %v1450_v30 = vpop.f32.mrb[41].mxu0 }
 0x45a   : > { %v1451_v31 = vadd.f32 %v1450_v30, %v1289_v46  ;;  %v1452_v53 = vpop.f32.mrb[42].mxu0  ;;  %2703 = vmatprep.subr.bf16.mxu1 %v2702_v48  ;;  %1775 = vmatprep.mubr.bf16.mxu0 %v2702_v48 }
 0x45b   : > { %v1453_v54 = vadd.f32 %v1452_v53, %v1294_v52  ;;  %v1454_v32 = vpop.f32.mrb[43].mxu0  ;;  %2705 = vmatpush1.bf16.msra.mxu1 %v2704_v45  ;;  %1776 = vmatmul.mubr.bf16.gmra.mrb[68].mxu0 %v2704_v45  ;;  %v1491_v33 = vmax.f32 %v1449_v51, 0.0 }
 0x45c   : > { %v1455_v55 = vadd.f32 %v1454_v32, %v1294_v52  ;;  %v1492_v34 = vmax.f32 %v1451_v31, 0.0 }
 0x45d   : > { %v1493_v57 = vmax.f32 %v1453_v54, 0.0 }
 0x45e   : > { %v1494_v58 = vmax.f32 %v1455_v55, 0.0 }
 0x45f   : > { %v2708_v60 = vpack.c.bf16 %v1493_v57, %v1491_v33 }
 0x460   : > { %v2706_v63 = vpack.c.bf16 %v1494_v58, %v1492_v34  ;;  %v1458_v14 = vpop.f32.mrb[44].mxu0 }
 0x461   : > { %v1459_v35 = vadd.f32 %v1458_v14, %v1299_v62  ;;  %v1460_v36 = vpop.f32.mrb[45].mxu0 }
 0x462   : > { %v1461_v1 = vadd.f32 %v1460_v36, %v1299_v62  ;;  %v1462_v2 = vpop.f32.mrb[46].mxu0  ;;  %2707 = vmatprep.subr.bf16.mxu1 %v2706_v63  ;;  %1785 = vmatprep.mubr.bf16.mxu0 %v2706_v63 }
 0x463   : > { %v1463_v3 = vadd.f32 %v1462_v2, %v1304_v0  ;;  %v1464_v4 = vpop.f32.mrb[47].mxu0  ;;  %2709 = vmatpush1.bf16.msra.mxu1 %v2708_v60  ;;  %1786 = vmatmul.mubr.bf16.gmra.mrb[72].mxu0 %v2708_v60  ;;  %v1495_v6 = vmax.f32 %v1459_v35, 0.0  ;;  %v2897_v2 = vld [vmem:[%s3869_s4 + $0x48] sm:$0xff]  }
 0x464   : > { %v1465_v5 = vadd.f32 %v1464_v4, %v1304_v0  ;;  %v1496_v9 = vmax.f32 %v1461_v1, 0.0  ;;  %v2895_v0 = vld [vmem:[%s3869_s4 + $0x40] sm:$0xff]   ;;  %v2899_v4 = vld [vmem:[%s3869_s4 + $0x50] sm:$0xff]  }
 0x465   : > { %v1497_v7 = vmax.f32 %v1463_v3, 0.0  ;;  %v2896_v1 = vld [vmem:[%s3869_s4 + $0x60] sm:$0xff]   ;;  %v2898_v3 = vld [vmem:[%s3869_s4 + $0x68] sm:$0xff]  }
 0x466   : > { %v1498_v12 = vmax.f32 %v1465_v5, 0.0  ;;  %v2900_v5 = vld [vmem:[%s3869_s4 + $0x70] sm:$0xff]  }
 0x467   : > { %v2712_v17 = vpack.c.bf16 %v1497_v7, %v1495_v6  ;;  %v2901_v6 = vld [vmem:[%s3869_s4 + $0x58] sm:$0xff]  }
 0x468   : > { %v2710_v18 = vpack.c.bf16 %v1498_v12, %v1496_v9  ;;  %v2902_v7 = vld [vmem:[%s3869_s4 + $0x78] sm:$0xff]   ;;  %v2903_v9 = vld [vmem:[%s3873_s8 + $0x40] sm:$0xff]   ;;  %v2905_v12 = vld [vmem:[%s3873_s8 + $0x48] sm:$0xff]  }
 0x46a   : > { %2711 = vmatprep.subr.bf16.mxu1 %v2710_v18  ;;  %1795 = vmatprep.mubr.bf16.mxu0 %v2710_v18  ;;  %v2907_v18 = vld [vmem:[%s3873_s8 + $0x50] sm:$0xff]  }
 0x46b   : > { %2713 = vmatpush1.bf16.msra.mxu1 %v2712_v17  ;;  %1796 = vmatmul.mubr.bf16.gmra.mrb[76].mxu0 %v2712_v17  ;;  %v2906_v17 = vld [vmem:[%s3873_s8 + $0x8] sm:$0xff]  }
 0x46c   : > { %2715 = vmatprep.subr.bf16.mxu1 %v3548_v25  ;;  %1982 = vmatprep.mubr.bf16.mxu0 %v2992_v56 }
 0x46e   : > { %1566 = vmatmul.mubr.f32.vlgmr.msra.gmra.mrb[64].mxu1 %v1500_v19  ;;  %v2908_v19 = vld [vmem:[%s3873_s8 + $0x10] sm:$0xff]  }
 0x46f   : > { %2717 = vmatpush1.bf16.msra.mxu1 %v3546_v24  ;;  %1636 = vmatprep.mubr.f32.mxu1 %v2993_v43  ;;  %v1048_v24 = vld [vmem:[#allocation3] sm:$0xff] }
 0x470   : > { %2719 = vmatprep.subr.bf16.mxu1 %v3554_v49 }
 0x473   : > { %2721 = vmatpush1.bf16.msra.mxu1 %v3552_v47 }
 0x474   : > { %2723 = vmatprep.subr.bf16.mxu1 %v3560_v15 }
 0x477   : > { %2725 = vmatpush1.bf16.msra.mxu1 %v3558_v13 }
 0x478   : > { %2727 = vmatprep.subr.bf16.mxu1 %v3566_v16 }
 0x47b   : > { %2729 = vmatpush1.bf16.msra.mxu1 %v3564_v11 }
 0x47c   : > { %2731 = vmatprep.subr.bf16.mxu1 %v3572_v42 }
 0x47f   : > { %2733 = vmatpush1.bf16.msra.mxu1 %v3570_v40 }
 0x480   : > { %2735 = vmatprep.subr.bf16.mxu1 %v3578_v61 }
 0x483   : > { %2737 = vmatpush1.bf16.msra.mxu1 %v3576_v59 }
 0x484   : > { %2739 = vmatprep.subr.bf16.mxu1 %v3584_v10 }
 0x487   : > { %2741 = vmatpush1.bf16.msra.mxu1 %v3582_v8 }
 0x488   : > { %2743 = vmatprep.subr.bf16.mxu1 %v3590_v41 }
 0x48b   : > { %2745 = vmatpush1.bf16.msra.mxu1 %v3588_v39 }
 0x48e   : > { %1637 = vmatmul.mubr.f32.vlgmr.msra.gmra.mrb[64].mxu1 %v1048_v24  ;;  %v2909_v24 = vld [vmem:[%s3873_s8 + $0x58] sm:$0xff]  }
 0x48f   : > { %2022 = vmatprep.mubr.bf16.mxu1 %v2992_v56 }
 0x506   : > { %v1727_v25 = vpop.f32.mrb[48].mxu0 }
 0x507   : > { %v1729_v47 = vpop.f32.mrb[49].mxu0 }
 0x508   : > { %v1731_v49 = vpop.f32.mrb[50].mxu0 }
 0x509   : > { %v1806_v13 = vpack.c.bf16 %v1731_v49, %v1727_v25  ;;  %v1733_v15 = vpop.f32.mrb[51].mxu0  ;;  %v2910_v25 = vld [vmem:[%s3873_s8 + $0x18] sm:$0xff]   ;;  %v2912_v49 = vld [vmem:[%s3873_s8 + $0x20] sm:$0xff]  }
 0x50a   : > { %v1807_v11 = vpack.c.bf16 %v1733_v15, %v1729_v47  ;;  %v2911_v47 = vld [vmem:[%s3873_s8 + $0x60] sm:$0xff]   ;;  %v2914_v15 = vld [vmem:[%s3873_s8 + $0x28] sm:$0xff]  }
 0x50c   : > { %1950 = vmatprep.subr.bf16.mxu0 %v1807_v11  ;;  %2784 = vmatprep.subr.bf16.mxu1 %v1807_v11  ;;  %v2915_v11 = vld [vmem:[%s3873_s8 + $0x70] sm:$0xff]  }
 0x50d   : > { %1951 = vmatpush1.bf16.msra.mxu0 %v1806_v13  ;;  %2792 = vmatpush1.bf16.msra.mxu1 %v1806_v13  ;;  %v2913_v13 = vld [vmem:[%s3873_s8 + $0x68] sm:$0xff]  }
 0x50e   : > { %v1737_v16 = vpop.f32.mrb[52].mxu0 }
 0x50f   : > { %v1739_v40 = vpop.f32.mrb[53].mxu0 }
 0x510   : > { %v1741_v42 = vpop.f32.mrb[54].mxu0 }
 0x511   : > { %v1808_v59 = vpack.c.bf16 %v1741_v42, %v1737_v16  ;;  %v1743_v61 = vpop.f32.mrb[55].mxu0  ;;  %v1825_v16 = vpop.permute.xlu0 %1824 }
 0x512   : > { %v1809_v8 = vpack.c.bf16 %v1743_v61, %v1739_v40  ;;  %v1830_v40 = vpop.permute.xlu1 %1829 }
 0x514   : > { %1952 = vmatprep.subr.bf16.mxu0 %v1809_v8  ;;  %2785 = vmatprep.subr.bf16.mxu1 %v1809_v8 }
 0x515   : > { %1953 = vmatpush1.bf16.msra.mxu0 %v1808_v59  ;;  %2793 = vmatpush1.bf16.msra.mxu1 %v1808_v59  ;;  %v1835_v42 = vpop.permute.xlu0 %1834 }
 0x516   : > { %v1747_v10 = vpop.f32.mrb[56].mxu0  ;;  %v1840_v59 = vpop.permute.xlu1 %1839 }
 0x517   : > { %v1749_v39 = vpop.f32.mrb[57].mxu0 }
 0x518   : > { %v1751_v41 = vpop.f32.mrb[58].mxu0 }
 0x519   : > { %v1810_v20 = vpack.c.bf16 %v1751_v41, %v1747_v10  ;;  %v1753_v21 = vpop.f32.mrb[59].mxu0  ;;  %v3799_v61 = vpop.permute.xlu0 %1844 }
 0x51a   : > { %v1811_v22 = vpack.c.bf16 %v1753_v21, %v1749_v39  ;;  %v3801_v8 = vpop.permute.xlu1 %1849 }
 0x51c   : > { %1954 = vmatprep.subr.bf16.mxu0 %v1811_v22  ;;  %2786 = vmatprep.subr.bf16.mxu1 %v1811_v22 }
 0x51d   : > { %1955 = vmatpush1.bf16.msra.mxu0 %v1810_v20  ;;  %2794 = vmatpush1.bf16.msra.mxu1 %v1810_v20  ;;  %v3803_v10 = vpop.permute.xlu0 %1854 }
 0x51e   : > { %v1757_v23 = vpop.f32.mrb[60].mxu0  ;;  %v3805_v39 = vpop.permute.xlu1 %1859 }
 0x51f   : > { %v1759_v26 = vpop.f32.mrb[61].mxu0 }
 0x520   : > { %v1761_v27 = vpop.f32.mrb[62].mxu0 }
 0x521   : > { %v1812_v28 = vpack.c.bf16 %v1761_v27, %v1757_v23  ;;  %v1763_v37 = vpop.f32.mrb[63].mxu0  ;;  %v1865_v41 = vpop.permute.xlu0 %1864 }
 0x522   : > { %v1813_v38 = vpack.c.bf16 %v1763_v37, %v1759_v26  ;;  %v1870_v20 = vpop.permute.xlu1 %1869 }
 0x524   : > { %1956 = vmatprep.subr.bf16.mxu0 %v1813_v38  ;;  %2787 = vmatprep.subr.bf16.mxu1 %v1813_v38 }
 0x525   : > { %1957 = vmatpush1.bf16.msra.mxu0 %v1812_v28  ;;  %2795 = vmatpush1.bf16.msra.mxu1 %v1812_v28 }
 0x526   : > { %v1767_v44 = vpop.f32.mrb[64].mxu0 }
 0x527   : > { %v1769_v29 = vpop.f32.mrb[65].mxu0 }
 0x528   : > { %v1771_v45 = vpop.f32.mrb[66].mxu0 }
 0x529   : > { %v1814_v46 = vpack.c.bf16 %v1771_v45, %v1767_v44  ;;  %v1773_v48 = vpop.f32.mrb[67].mxu0 }
 0x52a   : > { %v1815_v50 = vpack.c.bf16 %v1773_v48, %v1769_v29 }
 0x52c   : > { %1958 = vmatprep.subr.bf16.mxu0 %v1815_v50  ;;  %2788 = vmatprep.subr.bf16.mxu1 %v1815_v50 }
 0x52d   : > { %1959 = vmatpush1.bf16.msra.mxu0 %v1814_v46  ;;  %2796 = vmatpush1.bf16.msra.mxu1 %v1814_v46 }
 0x52e   : > { %v1777_v51 = vpop.f32.mrb[68].mxu0 }
 0x52f   : > { %v1779_v30 = vpop.f32.mrb[69].mxu0 }
 0x530   : > { %v1781_v52 = vpop.f32.mrb[70].mxu0 }
 0x531   : > { %v1816_v31 = vpack.c.bf16 %v1781_v52, %v1777_v51  ;;  %v1783_v53 = vpop.f32.mrb[71].mxu0 }
 0x532   : > { %v1817_v54 = vpack.c.bf16 %v1783_v53, %v1779_v30 }
 0x534   : > { %1960 = vmatprep.subr.bf16.mxu0 %v1817_v54  ;;  %2789 = vmatprep.subr.bf16.mxu1 %v1817_v54 }
 0x535   : > { %1961 = vmatpush1.bf16.msra.mxu0 %v1816_v31  ;;  %2797 = vmatpush1.bf16.msra.mxu1 %v1816_v31 }
 0x536   : > { %v1787_v32 = vpop.f32.mrb[72].mxu0 }
 0x537   : > { %v1789_v55 = vpop.f32.mrb[73].mxu0 }
 0x538   : > { %v1791_v33 = vpop.f32.mrb[74].mxu0 }
 0x539   : > { %v1818_v57 = vpack.c.bf16 %v1791_v33, %v1787_v32  ;;  %v1793_v34 = vpop.f32.mrb[75].mxu0 }
 0x53a   : > { %v1819_v58 = vpack.c.bf16 %v1793_v34, %v1789_v55  ;;  %v1875_v34 = vpop.permute.xlu0 %1874 }
 0x53c   : > { %1962 = vmatprep.subr.bf16.mxu0 %v1819_v58  ;;  %2790 = vmatprep.subr.bf16.mxu1 %v1819_v58  ;;  %v1880_v58 = vpop.permute.xlu1 %1879 }
 0x53d   : > { %1963 = vmatpush1.bf16.msra.mxu0 %v1818_v57  ;;  %2798 = vmatpush1.bf16.msra.mxu1 %v1818_v57 }
 0x53e   : > { %v1797_v60 = vpop.f32.mrb[76].mxu0 }
 0x53f   : > { %v1799_v62 = vpop.f32.mrb[77].mxu0 }
 0x540   : > { %v1801_v63 = vpop.f32.mrb[78].mxu0 }
 0x541   : > { %v1820_v14 = vpack.c.bf16 %v1801_v63, %v1797_v60  ;;  %v1803_v35 = vpop.f32.mrb[79].mxu0 }
 0x542   : > { %v1821_v36 = vpack.c.bf16 %v1803_v35, %v1799_v62 }
 0x544   : > { %1964 = vmatprep.subr.bf16.mxu0 %v1821_v36  ;;  %2791 = vmatprep.subr.bf16.mxu1 %v1821_v36 }
 0x545   : > { %1965 = vmatpush1.bf16.msra.mxu0 %v1820_v14  ;;  %2799 = vmatpush1.bf16.msra.mxu1 %v1820_v14 }
 0x546   : > { %2644 = vmatprep.subr.bf16.mxu0 %v2903_v9 }
 0x548   : > { %1983 = vmatmul.mubr.bf16.vlgmr.msra.gmra.mrb[80].mxu0 %v2895_v0  ;;  %2023 = vmatmul.mubr.bf16.vlgmr.msra.gmra.mrb[68].mxu1 %v2896_v1 }
 0x549   : > { %1992 = vmatprep.mubr.bf16.mxu0 %v2992_v56  ;;  %2032 = vmatprep.mubr.bf16.mxu1 %v2992_v56 }
 0x550   : > { %1993 = vmatmul.mubr.bf16.gmra.mrb[84].mxu0 %v2897_v2  ;;  %2033 = vmatmul.mubr.bf16.gmra.mrb[72].mxu1 %v2898_v3 }
 0x551   : > { %2002 = vmatprep.mubr.bf16.mxu0 %v2992_v56  ;;  %2042 = vmatprep.mubr.bf16.mxu1 %v2992_v56 }
 0x558   : > { %2003 = vmatmul.mubr.bf16.gmra.mrb[88].mxu0 %v2899_v4  ;;  %2043 = vmatmul.mubr.bf16.gmra.mrb[76].mxu1 %v2900_v5 }
 0x559   : > { %2012 = vmatprep.mubr.bf16.mxu0 %v2992_v56  ;;  %2052 = vmatprep.mubr.bf16.mxu1 %v2992_v56  ;;  %v2904_v56 = vld [vmem:[%s3873_s8] sm:$0xff]  }
 0x55a   : > { %2645 = vmatpush3.bf16.msra.mxu0 %v2904_v56 }
 0x55b   : > { %2646 = vmatprep.subr.bf16.mxu0 %v2905_v12 }
 0x55e   : > { %2647 = vmatpush3.bf16.msra.mxu0 %v2906_v17 }
 0x55f   : > { %2648 = vmatprep.subr.bf16.mxu0 %v2907_v18 }
 0x560   : > { %2013 = vmatmul.mubr.bf16.gmra.mrb[92].mxu0 %v2901_v6  ;;  %2053 = vmatmul.mubr.bf16.gmra.mrb[80].mxu1 %v2902_v7 }
 0x561   : > { %2161 = vmatprep.mubr.f32.mxu1 %v2993_v43 }
 0x562   : > { %2649 = vmatpush3.bf16.msra.mxu0 %v2908_v19 }
 0x563   : > { %2650 = vmatprep.subr.bf16.mxu0 %v2909_v24 }
 0x566   : > { %2651 = vmatpush3.bf16.msra.mxu0 %v2910_v25 }
 0x567   : > { %2652 = vmatprep.subr.bf16.mxu0 %v2911_v47 }
 0x56a   : > { %2653 = vmatpush3.bf16.msra.mxu0 %v2912_v49 }
 0x56b   : > { %2654 = vmatprep.subr.bf16.mxu0 %v2913_v13 }
 0x56e   : > { %2655 = vmatpush3.bf16.msra.mxu0 %v2914_v15 }
 0x56f   : > { %2656 = vmatprep.subr.bf16.mxu0 %v2915_v11 }
 0x61b   : > { %v1984_v21 = vpop.f32.mrb[80].mxu0  ;;  %v2024_v22 = vpop.f32.mrb[68].mxu1 }
 0x61c   : > { %v1985_v23 = vadd.f32 %v1984_v21, %v1825_v16  ;;  %v2025_v26 = vadd.f32 %v2024_v22, %v1865_v41  ;;  %v1986_v27 = vpop.f32.mrb[81].mxu0  ;;  %v2026_v28 = vpop.f32.mrb[69].mxu1 }
 0x61d   : > { %v1987_v37 = vadd.f32 %v1986_v27, %v1825_v16  ;;  %v2027_v38 = vadd.f32 %v2026_v28, %v1865_v41  ;;  %v1988_v44 = vpop.f32.mrb[82].mxu0  ;;  %v2028_v29 = vpop.f32.mrb[70].mxu1 }
 0x61e   : > { %v1989_v45 = vadd.f32 %v1988_v44, %v1830_v40  ;;  %v2029_v46 = vadd.f32 %v2028_v29, %v1870_v20  ;;  %v1990_v48 = vpop.f32.mrb[83].mxu0  ;;  %v2030_v50 = vpop.f32.mrb[71].mxu1  ;;  %v2063_v52 = vmax.f32 %v1985_v23, 0.0  ;;  %v2079_v31 = vmax.f32 %v2025_v26, 0.0 }
 0x61f   : > { %v1991_v51 = vadd.f32 %v1990_v48, %v1830_v40  ;;  %v2031_v30 = vadd.f32 %v2030_v50, %v1870_v20  ;;  %v2064_v32 = vmax.f32 %v1987_v37, 0.0  ;;  %v2080_v55 = vmax.f32 %v2027_v38, 0.0  ;;  %v1885_v40 = vpop.permute.xlu0 %1884 }
 0x620   : > { %v2065_v53 = vmax.f32 %v1989_v45, 0.0  ;;  %v2081_v54 = vmax.f32 %v2029_v46, 0.0 }
 0x621   : > { %v2066_v33 = vmax.f32 %v1991_v51, 0.0  ;;  %v2082_v57 = vmax.f32 %v2031_v30, 0.0 }
 0x622   : > { %v2748_v60 = vpack.c.bf16 %v2065_v53, %v2063_v52  ;;  %v3807_v62 = vpack.c.bf16 %v2081_v54, %v2079_v31 }
 0x623   : > { %v2746_v63 = vpack.c.bf16 %v2066_v33, %v2064_v32  ;;  %v3809_v14 = vpack.c.bf16 %v2082_v57, %v2080_v55  ;;  %v1994_v35 = vpop.f32.mrb[84].mxu0  ;;  %v2034_v36 = vpop.f32.mrb[72].mxu1 }
 0x624   : > { %v1995_v0 = vadd.f32 %v1994_v35, %v1835_v42  ;;  %v2035_v1 = vadd.f32 %v2034_v36, %v1875_v34  ;;  %v1996_v2 = vpop.f32.mrb[85].mxu0  ;;  %v2036_v3 = vpop.f32.mrb[73].mxu1 }
 0x625   : > { %v1997_v4 = vadd.f32 %v1996_v2, %v1835_v42  ;;  %v2037_v5 = vadd.f32 %v2036_v3, %v1875_v34  ;;  %v1998_v6 = vpop.f32.mrb[86].mxu0  ;;  %v2038_v7 = vpop.f32.mrb[74].mxu1  ;;  %2747 = vmatprep.subr.bf16.mxu1 %v2746_v63 }
 0x626   : > { %v1999_v9 = vadd.f32 %v1998_v6, %v1840_v59  ;;  %v2039_v56 = vadd.f32 %v2038_v7, %v1880_v58  ;;  %v2000_v12 = vpop.f32.mrb[87].mxu0  ;;  %v2040_v17 = vpop.f32.mrb[75].mxu1  ;;  %2749 = vmatpush1.bf16.msra.mxu1 %v2748_v60  ;;  %v2067_v24 = vmax.f32 %v1995_v0, 0.0  ;;  %v2083_v25 = vmax.f32 %v2035_v1, 0.0 }
 0x627   : > { %v2001_v18 = vadd.f32 %v2000_v12, %v1840_v59  ;;  %v2041_v19 = vadd.f32 %v2040_v17, %v1880_v58  ;;  %v2068_v13 = vmax.f32 %v1997_v4, 0.0  ;;  %v2084_v15 = vmax.f32 %v2037_v5, 0.0  ;;  %v1890_v42 = vpop.permute.xlu1 %1889  ;;  %v1895_v34 = vpop.permute.xlu0 %1894 }
 0x628   : > { %v2069_v47 = vmax.f32 %v1999_v9, 0.0  ;;  %v2085_v49 = vmax.f32 %v2039_v56, 0.0 }
 0x629   : > { %v2070_v11 = vmax.f32 %v2001_v18, 0.0  ;;  %v2086_v16 = vmax.f32 %v2041_v19, 0.0 }
 0x62a   : > { %v2752_v41 = vpack.c.bf16 %v2069_v47, %v2067_v24  ;;  %v3811_v20 = vpack.c.bf16 %v2085_v49, %v2083_v25 }
 0x62b   : > { %v2750_v21 = vpack.c.bf16 %v2070_v11, %v2068_v13  ;;  %v3813_v22 = vpack.c.bf16 %v2086_v16, %v2084_v15  ;;  %v2004_v23 = vpop.f32.mrb[88].mxu0  ;;  %v2044_v26 = vpop.f32.mrb[76].mxu1 }
 0x62c   : > { %v2005_v59 = vadd.f32 %v2004_v23, %v3799_v61  ;;  %v2045_v27 = vadd.f32 %v2044_v26, %v1885_v40  ;;  %v2006_v28 = vpop.f32.mrb[89].mxu0  ;;  %v2046_v37 = vpop.f32.mrb[77].mxu1  ;;  %v2916_v23 = vld [vmem:[%s3873_s8 + $0x30] sm:$0xff]  }
 0x62d   : > { %v2007_v38 = vadd.f32 %v2006_v28, %v3799_v61  ;;  %v2047_v44 = vadd.f32 %v2046_v37, %v1885_v40  ;;  %v2008_v29 = vpop.f32.mrb[90].mxu0  ;;  %v2048_v45 = vpop.f32.mrb[78].mxu1  ;;  %2751 = vmatprep.subr.bf16.mxu1 %v2750_v21  ;;  %2657 = vmatpush3.bf16.msra.mxu0 %v2916_v23 }
 0x62e   : > { %v2009_v46 = vadd.f32 %v2008_v29, %v3801_v8  ;;  %v2049_v48 = vadd.f32 %v2048_v45, %v1890_v42  ;;  %v2010_v50 = vpop.f32.mrb[91].mxu0  ;;  %v2050_v51 = vpop.f32.mrb[79].mxu1  ;;  %2753 = vmatpush1.bf16.msra.mxu1 %v2752_v41  ;;  %v2071_v31 = vmax.f32 %v2005_v59, 0.0  ;;  %v2087_v53 = vmax.f32 %v2045_v27, 0.0 }
 0x62f   : > { %v2011_v30 = vadd.f32 %v2010_v50, %v3801_v8  ;;  %v2051_v52 = vadd.f32 %v2050_v51, %v1890_v42  ;;  %v2072_v55 = vmax.f32 %v2007_v38, 0.0  ;;  %v2088_v33 = vmax.f32 %v2047_v44, 0.0  ;;  %v1900_v58 = vpop.permute.xlu1 %1899  ;;  %v2352_v38 = vld [vmem:[%s3875_s10] sm:$0xff]  ;;  %v2353_v44 = vld [vmem:[%s3875_s10 + $0x8] sm:$0xff] }
 0x630   : > { %v2073_v54 = vmax.f32 %v2009_v46, 0.0  ;;  %v2089_v32 = vmax.f32 %v2049_v48, 0.0  ;;  %v2779_v29 = vpack.c.bf16 %v2353_v44, %v2352_v38  ;;  %v2994_v45 = vmov 0.0|0.0   ;;  %v2354_v46 = vld [vmem:[%s3875_s10 + $0x10] sm:$0xff]  ;;  %v2355_v48 = vld [vmem:[%s3875_s10 + $0x18] sm:$0xff] }
 0x631   : > { %v2074_v61 = vmax.f32 %v2011_v30, 0.0  ;;  %v2090_v57 = vmax.f32 %v2051_v52, 0.0  ;;  %v2782_v50 = vpack.c.bf16 %v2355_v48, %v2354_v46  ;;  %v2622_v30 = vld [vmem:[%s3874_s9] ss:$0 sm:$0xff] }
 0x632   : > { %v2756_v60 = vpack.c.bf16 %v2073_v54, %v2071_v31  ;;  %v2772_v63 = vpack.c.bf16 %v2089_v32, %v2087_v53 }
 0x633   : > { %v2754_v35 = vpack.c.bf16 %v2074_v61, %v2072_v55  ;;  %v2770_v36 = vpack.c.bf16 %v2090_v57, %v2088_v33  ;;  %v2014_v0 = vpop.f32.mrb[92].mxu0  ;;  %v2054_v1 = vpop.f32.mrb[80].mxu1  ;;  %v2639_v33 = vld [vmem:[%s3876_s11] ss:$0 sm:$0xff] }
 0x634   : > { %v2015_v2 = vadd.f32 %v2014_v0, %v3803_v10  ;;  %v2055_v8 = vadd.f32 %v2054_v1, %v1895_v34  ;;  %v2016_v3 = vpop.f32.mrb[93].mxu0  ;;  %v2056_v4 = vpop.f32.mrb[81].mxu1 }
 0x635   : > { %v2017_v5 = vadd.f32 %v2016_v3, %v3803_v10  ;;  %v2057_v6 = vadd.f32 %v2056_v4, %v1895_v34  ;;  %v2018_v7 = vpop.f32.mrb[94].mxu0  ;;  %v2058_v9 = vpop.f32.mrb[82].mxu1  ;;  %2755 = vmatprep.subr.bf16.mxu1 %v2754_v35 }
 0x636   : > { %v2019_v56 = vadd.f32 %v2018_v7, %v3805_v39  ;;  %v2059_v12 = vadd.f32 %v2058_v9, %v1900_v58  ;;  %v2020_v17 = vpop.f32.mrb[95].mxu0  ;;  %v2060_v18 = vpop.f32.mrb[83].mxu1  ;;  %2757 = vmatpush1.bf16.msra.mxu1 %v2756_v60  ;;  %v2075_v25 = vmax.f32 %v2015_v2, 0.0  ;;  %v2091_v47 = vmax.f32 %v2055_v8, 0.0 }
 0x637   : > { %v2021_v19 = vadd.f32 %v2020_v17, %v3805_v39  ;;  %v2061_v24 = vadd.f32 %v2060_v18, %v1900_v58  ;;  %v2076_v15 = vmax.f32 %v2017_v5, 0.0  ;;  %v2092_v11 = vmax.f32 %v2057_v6, 0.0  ;;  %v2096_v39 = vld [vmem:[#allocation3 + $0x10] sm:$0xff] }
 0x638   : > { %v2077_v49 = vmax.f32 %v2019_v56, 0.0  ;;  %v2093_v13 = vmax.f32 %v2059_v12, 0.0 }
 0x639   : > { %v2078_v10 = vmax.f32 %v2021_v19, 0.0  ;;  %v2094_v16 = vmax.f32 %v2061_v24, 0.0 }
 0x63a   : > { %v2760_v40 = vpack.c.bf16 %v2077_v49, %v2075_v25  ;;  %v2776_v42 = vpack.c.bf16 %v2093_v13, %v2091_v47 }
 0x63b   : > { %v2758_v41 = vpack.c.bf16 %v2078_v10, %v2076_v15  ;;  %v2774_v21 = vpack.c.bf16 %v2094_v16, %v2092_v11 }
 0x63d   : > { %2759 = vmatprep.subr.bf16.mxu1 %v2758_v41 }
 0x63e   : > { %2761 = vmatpush1.bf16.msra.mxu1 %v2760_v40 }
 0x63f   : > { %2763 = vmatprep.subr.bf16.mxu1 %v3809_v14  ;;  %v2917_v14 = vld [vmem:[%s3873_s8 + $0x78] sm:$0xff]  }
 0x640   : > { %2658 = vmatprep.subr.bf16.mxu0 %v2917_v14 }
 0x642   : > { %2765 = vmatpush1.bf16.msra.mxu1 %v3807_v62  ;;  %v2918_v62 = vld [vmem:[%s3873_s8 + $0x38] sm:$0xff]  }
 0x643   : > { %2767 = vmatprep.subr.bf16.mxu1 %v3813_v22  ;;  %2659 = vmatpush3.bf16.msra.mxu0 %v2918_v62 }
 0x646   : > { %2769 = vmatpush1.bf16.msra.mxu1 %v3811_v20  ;;  %v2171_v20 = vstv %s2170_s14 }
 0x647   : > { %2771 = vmatprep.subr.bf16.mxu1 %v2770_v36 }
 0x64a   : > { %2773 = vmatpush1.bf16.msra.mxu1 %v2772_v63 }
 0x64b   : > { %2775 = vmatprep.subr.bf16.mxu1 %v2774_v21 }
 0x64e   : > { %2777 = vmatpush1.bf16.msra.mxu1 %v2776_v42 }
 0x64f   : > { %2778 = vmatprep.subr.bf16.mxu1 %v2994_v45 }
 0x651   : > { %2162 = vmatmul.mubr.f32.vlgmr.msra.gmra.mrb[64].mxu1 %v2096_v39 }
 0x652   : > { %2780 = vmatpush3.bf16.msra.mxu1 %v2779_v29  ;;  %2679 = vmatprep.mubr.msk.f32.mxu1 %vm2995_vm1, %v2993_v43 }
 0x653   : > { %2781 = vmatprep.subr.bf16.mxu1 %v2994_v45 }
 0x656   : > { %2783 = vmatpush3.bf16.msra.mxu1 %v2782_v50 }
 0x724   : > { %v2163_v22 = vpop.f32.mrb[64].mxu1 }
 0x725   : > { %v2172_v26 = vadd.f32 %v2171_v20, %v2163_v22  ;;  %v2165_v59 = vpop.f32.mrb[65].mxu1 }
 0x726   : > { %v2173_v27 = vadd.f32 %v2171_v20, %v2165_v59 }
 0x727   : > { %v2174_v37 = vpack.c.bf16 %v2172_v26, %v2172_v26 }
 0x728   : > { %v2175_v28 = vpack.c.bf16 %v2173_v27, %v2173_v27 }
 0x72a   : > { %2343 = vmatprep.mubr.bf16.mxu0 %v2175_v28 }
 0x72b   : > { %2344 = vmatmul.mubr.bf16.vlgmr.msra.gmra.mrb[96].mxu0 %v2174_v37 }
 0x7fe   : > { %v2660_v51 = vpop.f32.mrb[96].mxu0 }
 0x7ff   : > { %v2661_v52 = vpop.f32.mrb[97].mxu0 }
 0x800   : > { %v2662_v31 = vadd.f32 %v2661_v52, %v2660_v51  ;;  %v2663_v53 = vpop.f32.mrb[98].mxu0 }
 0x801   : > { %v2664_v54 = vpop.f32.mrb[99].mxu0 }
 0x802   : > { %v2346_v32 = vadd.f32 %v2662_v31, %v2622_v30 }
 0x804   : > { %v2351_v55 = vmax.f32 %v2346_v32, 0.0 }
 0x806   : > { %2680 = vmatmul.mubr.msk.f32.vlgmr.msra.gmra.mrb[66].mxu1 %vm2363_vm2, %v2351_v55 }
 0x8d9   : > { %v2433_v61 = vpop.f32.mrb[66].mxu1 }
 0x8da   : > { %v2434_v43 = vadd.f32 %v2639_v33, %v2433_v61  ;;  %v2681_v57 = vpop.f32.mrb[67].mxu1 }
 0x8dc   : > { %v2438_v34 = vsel %vm2437_vm3, %v2434_v43, -inf }
 0x8dd   : > { %2439 = vmax.xlane.f32.xlu0 %v2438_v34 }
 0x96a   : > { %v2440_v58 = vpop.xlane.xlu0 %2439 }
 0x96b   : > { %v2441_v60 = vsub.f32 %v2434_v43, %v2440_v58 }
 0x96d   : > { %v2442_v63 = vmul.f32 1.442695, %v2441_v60 }
 0x96f   : > { %2919 = vpow2.f32 %v2442_v63 }
 0x979   : > { %v2920_v35 = vpop.eup %2919 }
 0x97a   : > { %v2444_v36 = vsel %vm2437_vm3, %v2920_v35, 0.0 }
 0x97b   : > { %2445 = vadd.xlane.f32.xlu1 %v2444_v36 }
 0xa08   : > { %v2446_v0 = vpop.xlane.xlu1 %2445 }
 0xa09   : > { %2921 = vlog2.f32 %v2446_v0 }
 0xa13   : > { %v2922_v1 = vpop.eup %2921 }
 0xa14   : > { %v2448_v2 = vmul.f32 0.6931472, %v2922_v1 }
 0xa16   : > { %v2449_v8 = vsub.f32 %v2441_v60, %v2448_v2 }
 0xa18   : > { %2450 = vst.msk [vmem:[%s427_s30] sm:$0xff] %vm2437_vm3, %v2449_v8 }
 0xa19 PF: > { %s24_s23 = sadd.s32 1, %s2987_s23  }
 0xa1a   : > { %p21_p3 = scmp.ge.s32.totalorder %s24_s23, 4  }
 0xa1c   :  { %23 = sbr.rel (!%p21_p3) target bundleno = 3 (0x3), region = 107 }
 0xa23   :  { %2470 = vsyncpa [#allocation4], 1 }
 0xa24   :  { %2472 = vsyncpa [#allocation4 + $0x1], 1 }

</bundles_post_ra>
